<compile_context>
chip_gen: v6e
topology: v6e:2x2x1
jax: 0.10.0
libtpu: 0.0.40
codegen_flags: <defaults>
</compile_context>

<pallas_src>
import math
from functools import partial

import numpy as np
import jax
import jax.numpy as jnp
from jax import lax
from jax.experimental import pallas as pl
from jax.experimental.pallas import tpu as pltpu


# ---------------------------------------------------------------------------
# Host-side parameter preparation
# ---------------------------------------------------------------------------
def conv3x3_same_matrix(w_oihw, gh, gw):
    """Fold a 3x3 'same' conv on a fixed (gh, gw) grid into a dense matrix.

    Input rows are indexed (ci*gh*gw + yi*gw + xi)  == PyTorch (C,H,W) flatten.
    Output cols are indexed (co*gh*gw + yo*gw + xo) == PyTorch (C,H,W) flatten.
    """
    w = np.asarray(w_oihw, dtype=np.float32)          # (Cout, Cin, kh, kw)
    co_n, ci_n, kh, kw = w.shape
    hw = gh * gw
    A = np.zeros((ci_n * hw, co_n * hw), dtype=np.float32)
    for co in range(co_n):
        for ci in range(ci_n):
            for yo in range(gh):
                for xo in range(gw):
                    for dy in range(kh):
                        for dx in range(kw):
                            yi = yo + dy - kh // 2
                            xi = xo + dx - kw // 2
                            if 0 <= yi < gh and 0 <= xi < gw:
                                A[ci * hw + yi * gw + xi,
                                  co * hw + yo * gw + xo] += w[co, ci, dy, dx]
    return A


def prepare_params(p, gh, gw, nhead):
    """PyTorch-layout params -> kernel-ready packed params (bf16 weights, stacked layers)."""
    hw = gh * gw
    eps = 1e-5

    def fold_conv_bn(conv_w, conv_b, bn):
        g, beta, mean, var = (np.asarray(t, np.float32) for t in bn)
        sc = g / np.sqrt(var + eps)
        sh = beta - mean * sc + np.asarray(conv_b, np.float32) * sc
        A = conv3x3_same_matrix(conv_w, gh, gw)
        A = A * np.repeat(sc, hw)[None, :]            # fold BN scale into conv matrix
        return (jnp.asarray(A, jnp.bfloat16),
                jnp.asarray(np.repeat(sh, hw)[None, :], jnp.float32))

    A1, sh1 = fold_conv_bn(p["conv1_w"], p["conv1_b"], p["bn1"])
    A2, sh2 = fold_conv_bn(p["conv2_w"], p["conv2_b"], p["bn2"])

    E = int(A2.shape[-1])
    hd = E // nhead
    sm = 1.0 / math.sqrt(hd)

    wbig_l, w2_l, vec_l = [], [], []
    for lp in p["layers"]:
        winT = np.asarray(lp["in_proj_w"], np.float32).T               # (E, 3E)  q|k|v cols
        winT = np.concatenate([winT[:, :E] * sm, winT[:, E:]], axis=1)  # fold 1/sqrt(hd) into q
        bin_ = np.asarray(lp["in_proj_b"], np.float32)
        bin_ = np.concatenate([bin_[:E] * sm, bin_[E:]])
        woT = np.asarray(lp["out_proj_w"], np.float32).T                # (E, E)
        w1T = np.asarray(lp["lin1_w"], np.float32).T                    # (E, ff)
        w2T = np.asarray(lp["lin2_w"], np.float32).T                    # (ff, E)
        wbig_l.append(np.concatenate([winT, woT, w1T], axis=1))         # (E, 4E+ff)
        w2_l.append(w2T)
        vec_l.append(np.concatenate([
            bin_,                                         # [0, 3E)
            np.asarray(lp["out_proj_b"], np.float32),     # [3E, 4E)
            np.asarray(lp["ln1_g"], np.float32),          # [4E, 5E)
            np.asarray(lp["ln1_b"], np.float32),          # [5E, 6E)
            np.asarray(lp["lin1_b"], np.float32),         # [6E, 6E+ff)
            np.asarray(lp["lin2_b"], np.float32),         # [6E+ff, 7E+ff)
            np.asarray(lp["ln2_g"], np.float32),          # [7E+ff, 8E+ff)
            np.asarray(lp["ln2_b"], np.float32),          # [8E+ff, 9E+ff)
        ])[None, :])

    return {
        "A1": A1, "sh1": sh1, "A2": A2, "sh2": sh2,
        "fc_w": jnp.asarray(np.asarray(p["fc_w"], np.float32).T, jnp.bfloat16),   # (E, out)
        "fc_b": jnp.asarray(np.asarray(p["fc_b"], np.float32)[None, :], jnp.float32),
        "w_big": jnp.asarray(np.stack(wbig_l, 0), jnp.bfloat16),       # (L, E, 4E+ff)
        "w2":    jnp.asarray(np.stack(w2_l, 0), jnp.bfloat16),         # (L, ff, E)
        "vecs":  jnp.asarray(np.stack(vec_l, 0), jnp.float32),         # (L, 1, 9E+ff)
    }


# ---------------------------------------------------------------------------
# Fused kernel: CNN prologue + num_layers encoder layers + FC head
# ---------------------------------------------------------------------------
def make_fused_kernel(B, S, E, H, dim_ff):
    BS = B * S
    # packed big-weight lane offsets: [ in_proj(3E) | out_proj(E) | linear1(ff) ]
    o_wo = 3 * E
    o_w1 = 4 * E
    # packed small-vector lane offsets
    v_bin, v_bo, v_g1, v_b1 = 0, 3 * E, 4 * E, 5 * E
    v_fb1 = 6 * E
    v_fb2 = 6 * E + dim_ff
    v_g2 = 7 * E + dim_ff
    v_b2 = 8 * E + dim_ff

    def layernorm(x, g, b, eps=1e-5):
        mu = jnp.mean(x, axis=-1, keepdims=True)
        var = jnp.mean(jnp.square(x - mu), axis=-1, keepdims=True)
        return (x - mu) * lax.rsqrt(var + eps) * g + b

    def kernel(x_ref, a1_ref, sh1_ref, a2_ref, sh2_ref,
               fcw_ref, fcb_ref, bias_ref, maskv_ref,
               wbig_ref, w2_ref, vec_ref,
               out_ref, rows_ref):
        layer = pl.program_id(0)
        n_layers = pl.num_programs(0)

        # ------- CNN prologue (runs once): conv3x3+BN+ReLU twice as dense matmuls
        @pl.when(layer == 0)
        def _cnn():
            h1 = jnp.dot(x_ref[...], a1_ref[...],
                         preferred_element_type=jnp.float32) + sh1_ref[...]
            h1 = jnp.maximum(h1, 0.0)
            h2 = jnp.dot(h1.astype(jnp.bfloat16), a2_ref[...],
                         preferred_element_type=jnp.float32) + sh2_ref[...]
            rows_ref[...] = jnp.maximum(h2, 0.0)     # (B*S, E), PyTorch (C,H,W) order

        # ------- one post-LN transformer encoder layer (eval mode) --------------
        x = rows_ref[...]                                           # (BS, E) f32
        xb = x.astype(jnp.bfloat16)

        # packed QKV projection (1/sqrt(hd) already folded into the q columns)
        qkv = jnp.dot(xb, wbig_ref[:, 0:3 * E],
                      preferred_element_type=jnp.float32) + vec_ref[:, v_bin:v_bin + 3 * E]
        q = qkv[:, 0:E]
        k = qkv[:, E:2 * E]
        v = qkv[:, 2 * E:3 * E]

        # All heads at once via block-diagonal masking (no per-head lane slices):
        #   maskv[h*BS + j, c] = 1  iff  c // hd == h
        maskv = maskv_ref[...]                                       # (H*BS, E) f32
        k_bd = jnp.tile(k, (H, 1)) * maskv                           # (H*BS, E)
        v_bd = jnp.tile(v, (H, 1)) * maskv                           # (H*BS, E)

        # scores for all heads: s[i, h*BS + j] = q_h[i] . k_h[j]
        s = lax.dot_general(q, k_bd, (((1,), (1,)), ((), ())),
                            preferred_element_type=jnp.float32)      # (BS, H*BS) f32
        s = s + bias_ref[...]                                        # batch block mask
        s = s - jnp.max(s, axis=-1, keepdims=True)                   # row-global max (exact)
        prob = jnp.exp(s)                                            # masked entries -> 0
        o_un = jnp.dot(prob, v_bd, preferred_element_type=jnp.float32)     # (BS, E)
        denom = jnp.dot(prob, maskv, preferred_element_type=jnp.float32)   # per-head sums
        attn_cat = o_un * pl.reciprocal(denom, approx=True)          # normalized heads, concat layout

        attn = (jnp.dot(attn_cat.astype(jnp.bfloat16), wbig_ref[:, o_wo:o_wo + E],
                        preferred_element_type=jnp.float32)
                + vec_ref[:, v_bo:v_bo + E])

        y = layernorm(x + attn, vec_ref[:, v_g1:v_g1 + E], vec_ref[:, v_b1:v_b1 + E])

        ff = jnp.dot(y.astype(jnp.bfloat16), wbig_ref[:, o_w1:o_w1 + dim_ff],
                     preferred_element_type=jnp.float32) + vec_ref[:, v_fb1:v_fb1 + dim_ff]
        ff = jnp.maximum(ff, 0.0)                                    # ReLU FFN
        ff = jnp.dot(ff.astype(jnp.bfloat16), w2_ref[...],
                     preferred_element_type=jnp.float32) + vec_ref[:, v_fb2:v_fb2 + E]
        new_rows = layernorm(y + ff, vec_ref[:, v_g2:v_g2 + E], vec_ref[:, v_b2:v_b2 + E])
        rows_ref[...] = new_rows

        # ------- fused FC head: last sequence position of each batch element ----
        @pl.when(layer == n_layers - 1)
        def _head():
            last = new_rows.reshape(B, S, E)[:, S - 1, :]            # (B, E), free regroup
            out_ref[...] = (jnp.dot(last.astype(jnp.bfloat16), fcw_ref[...],
                                    preferred_element_type=jnp.float32)
                            + fcb_ref[...])

    return kernel


def _inv2(l):
    return (0, 0)


def _lay3(l):
    return (l, 0, 0)


def weather_forecaster_forward(x, kp, *, nhead):
    """Mirrors WeatherForecasterCNNTransformer.forward (eval mode)."""
    B, S, C, GH, GW = x.shape
    E = kp["A2"].shape[-1]
    OUT = kp["fc_w"].shape[-1]
    L = kp["w_big"].shape[0]
    dim_ff = kp["w2"].shape[1]
    BS = B * S
    H = nhead
    assert E % H == 0
    hd = E // H

    # (b,s) images flattened in (C,H,W) order -> rows of the conv matmul
    x2d = x.reshape(BS, C * GH * GW).astype(jnp.bfloat16)

    # batch block mask, tiled per head along lanes: (BS, H*BS)
    bid = np.arange(BS) // S
    bias_bs = np.where(bid[:, None] == bid[None, :], 0.0, -1e30).astype(np.float32)
    bias_flat = jnp.asarray(np.tile(bias_bs, (1, H)))
    # block-diagonal head mask: maskv[h*BS + j, c] = 1 iff c // hd == h
    r = np.arange(H * BS)
    c = np.arange(E)
    maskv = jnp.asarray(((r[:, None] // BS) == (c[None, :] // hd)).astype(np.float32))

    invariant = [x2d, kp["A1"], kp["sh1"], kp["A2"], kp["sh2"],
                 kp["fc_w"], kp["fc_b"], bias_flat, maskv]
    per_layer = [kp["w_big"], kp["w2"], kp["vecs"]]

    in_specs = ([pl.BlockSpec(tuple(a.shape), _inv2) for a in invariant]
                + [pl.BlockSpec((None,) + tuple(a.shape[1:]), _lay3) for a in per_layer])

    grid_spec = pltpu.PrefetchScalarGridSpec(
        num_scalar_prefetch=0,
        grid=(L,),
        in_specs=in_specs,
        out_specs=pl.BlockSpec((B, OUT), _inv2),
        scratch_shapes=[pltpu.VMEM((BS, E), jnp.float32)],   # resident residual stream
    )

    out = pl.pallas_call(
        make_fused_kernel(B, S, E, H, dim_ff),
        out_shape=jax.ShapeDtypeStruct((B, OUT), jnp.float32),
        grid_spec=grid_spec,
        compiler_params=pltpu.CompilerParams(
            dimension_semantics=("arbitrary",),
            vmem_limit_bytes=32 * 1024 * 1024,
        ),
    )(*invariant, *per_layer)
    return out.reshape(B, 1, C, GH, GW)


# ---------------------------------------------------------------------------
# Deterministic synthetic parameters in PyTorch layouts
# ---------------------------------------------------------------------------
def init_params(key, input_size, hidden_size, num_layers, output_size,
                grids=4, dim_ff=2048):
    E = hidden_size * grids * grids
    state = [key]

    def nxt():
        state[0], sub = jax.random.split(state[0])
        return sub

    def nrm(shape, std=0.05):
        return (std * jax.random.normal(nxt(), shape)).astype(jnp.float32)

    def bn(c):
        return ((1.0 + 0.1 * jax.random.normal(nxt(), (c,))).astype(jnp.float32),
                (0.1 * jax.random.normal(nxt(), (c,))).astype(jnp.float32),
                (0.1 * jax.random.normal(nxt(), (c,))).astype(jnp.float32),
                (0.5 + jax.random.uniform(nxt(), (c,))).astype(jnp.float32))

    p = {
        "conv1_w": nrm((hidden_size, input_size, 3, 3), 0.2),
        "conv1_b": nrm((hidden_size,), 0.1),
        "bn1": bn(hidden_size),
        "conv2_w": nrm((hidden_size, hidden_size, 3, 3), 0.2),
        "conv2_b": nrm((hidden_size,), 0.1),
        "bn2": bn(hidden_size),
        "fc_w": nrm((output_size, E)),          # PyTorch Linear weight (out, in)
        "fc_b": nrm((output_size,), 0.1),
        "layers": [],
    }
    for _ in range(num_layers):
        p["layers"].append({
            "in_proj_w": nrm((3 * E, E)),       # packed q,k,v as in nn.MultiheadAttention
            "in_proj_b": nrm((3 * E,), 0.02),
            "out_proj_w": nrm((E, E)),
            "out_proj_b": nrm((E,), 0.02),
            "ln1_g": jnp.ones((E,), jnp.float32),
            "ln1_b": jnp.zeros((E,), jnp.float32),
            "lin1_w": nrm((dim_ff, E)),
            "lin1_b": nrm((dim_ff,), 0.02),
            "lin2_w": nrm((E, dim_ff)),
            "lin2_b": nrm((E,), 0.02),
            "ln2_g": jnp.ones((E,), jnp.float32),
            "ln2_b": jnp.zeros((E,), jnp.float32),
        })
    return p


# ---------------------------------------------------------------------------
# Pure-JAX (XLA) reference of the PyTorch module, used as a numerical cross-check
# ---------------------------------------------------------------------------
def reference_forward(x, p, *, nhead):
    B, S, C, GH, GW = x.shape
    eps = 1e-5

    def bf(w):  # match the kernel's bf16 weight quantization
        return jnp.asarray(w).astype(jnp.bfloat16).astype(jnp.float32)

    def conv_bn_relu(h, w, b, bn):
        g, beta, mean, var = bn
        out = lax.conv_general_dilated(h, w, window_strides=(1, 1), padding="SAME",
                                       dimension_numbers=("NCHW", "OIHW", "NCHW"))
        out = out + jnp.asarray(b)[None, :, None, None]
        out = (out - mean[None, :, None, None]) / jnp.sqrt(var[None, :, None, None] + eps)
        out = out * g[None, :, None, None] + beta[None, :, None, None]
        return jnp.maximum(out, 0.0)

    def ln(t, g, b):
        mu = jnp.mean(t, -1, keepdims=True)
        var = jnp.mean(jnp.square(t - mu), -1, keepdims=True)
        return (t - mu) / jnp.sqrt(var + eps) * g + b

    h = x.reshape(B * S, C, GH, GW)
    h = conv_bn_relu(h, bf(p["conv1_w"]), p["conv1_b"], p["bn1"])
    h = conv_bn_relu(h, bf(p["conv2_w"]), p["conv2_b"], p["bn2"])
    rows = h.reshape(B, S, -1)                      # (B, S, E) in (C,H,W) order
    E = rows.shape[-1]
    hd = E // nhead

    for lp in p["layers"]:
        qkv = jnp.einsum("bse,fe->bsf", rows, bf(lp["in_proj_w"])) + lp["in_proj_b"]
        q, k, v = qkv[..., :E], qkv[..., E:2 * E], qkv[..., 2 * E:]

        def split(t):
            return t.reshape(B, S, nhead, hd).transpose(0, 2, 1, 3)

        qh, kh, vh = split(q), split(k), split(v)
        sc = jnp.einsum("bhqd,bhkd->bhqk", qh, kh) / math.sqrt(hd)
        pr = jax.nn.softmax(sc, axis=-1)
        oh = jnp.einsum("bhqk,bhkd->bhqd", pr, vh)
        attn = oh.transpose(0, 2, 1, 3).reshape(B, S, E)
        attn = jnp.einsum("bse,fe->bsf", attn, bf(lp["out_proj_w"])) + lp["out_proj_b"]
        y = ln(rows + attn, lp["ln1_g"], lp["ln1_b"])
        ff = jnp.maximum(jnp.einsum("bse,fe->bsf", y, bf(lp["lin1_w"])) + lp["lin1_b"], 0.0)
        ff = jnp.einsum("bsf,ef->bse", ff, bf(lp["lin2_w"])) + lp["lin2_b"]
        rows = ln(y + ff, lp["ln2_g"], lp["ln2_b"])

    last = rows[:, -1, :]                            # == transformer_out[-1]
    out = last @ bf(p["fc_w"]).T + p["fc_b"]
    return out.reshape(B, 1, C, GH, GW)


# ---------------------------------------------------------------------------
if __name__ == "__main__":
    # Shapes implied by the module: d_model = hidden_size*4*4, nhead = 8,
    # output_size must equal grid_data_length*4*4 for the final reshape.
    B, S = 2, 8
    input_size = 4            # grid_data_length
    hidden_size = 8           # d_model = 8 * 16 = 128 (divisible by nhead = 8)
    num_layers = 2
    GH = GW = 4
    output_size = input_size * GH * GW
    nhead = 8

    key = jax.random.PRNGKey(0)
    kx, kw = jax.random.split(key)
    x = jax.random.normal(kx, (B, S, input_size, GH, GW), dtype=jnp.float32)

    torch_like_params = init_params(kw, input_size, hidden_size, num_layers,
                                    output_size, grids=GH)
    kp = prepare_params(torch_like_params, GH, GW, nhead)

    fwd = jax.jit(partial(weather_forecaster_forward, nhead=nhead))
    out = jax.block_until_ready(fwd(x, kp))

    assert out.shape == (B, 1, input_size, GH, GW), out.shape
    assert bool(jnp.all(jnp.isfinite(out)))

    # Cross-check against a pure-JAX reference of the PyTorch module
    # (loose tolerance: kernel uses bf16 weights/activations on the MXU).
    ref = jax.block_until_ready(reference_forward(x, torch_like_params, nhead=nhead))
    max_diff = float(jnp.max(jnp.abs(out - ref)))
    assert bool(jnp.allclose(out, ref, atol=8e-2, rtol=8e-2)), max_diff

    print("KERNEL_OK")
</pallas_src>

<mosaic_0001>
module attributes {stable_mosaic.version = 11 : i64} {
  func.func @kernel(%arg0: i32, %arg1: memref<16x64xbf16, #tpu.memory_space<vmem>>, %arg2: memref<64x128xbf16, #tpu.memory_space<vmem>>, %arg3: memref<1x128xf32, #tpu.memory_space<vmem>>, %arg4: memref<128x128xbf16, #tpu.memory_space<vmem>>, %arg5: memref<1x128xf32, #tpu.memory_space<vmem>>, %arg6: memref<128x64xbf16, #tpu.memory_space<vmem>>, %arg7: memref<1x64xf32, #tpu.memory_space<vmem>>, %arg8: memref<16x128xf32, #tpu.memory_space<vmem>>, %arg9: memref<128x128xf32, #tpu.memory_space<vmem>>, %arg10: memref<1x128x2560xbf16, #tpu.memory_space<vmem>>, %arg11: memref<1x2048x128xbf16, #tpu.memory_space<vmem>>, %arg12: memref<1x1x3200xf32, #tpu.memory_space<vmem>>, %arg13: memref<2x64xf32, #tpu.memory_space<vmem>>, %arg14: memref<16x128xf32, #tpu.memory_space<vmem>>) attributes {dimension_semantics = [#tpu.dimension_semantics<arbitrary>], iteration_bounds = array<i64: 2>, scalar_prefetch = 0 : i64, scratch_operands = 1 : i64, tpu.core_type = #tpu.core_type<tc>, window_params = [{pipeline_mode = #tpu.pipeline_mode<synchronous>, transform_indices = @transform_0, window_bounds = array<i64: 16, 64>}, {pipeline_mode = #tpu.pipeline_mode<synchronous>, transform_indices = @transform_1, window_bounds = array<i64: 64, 128>}, {pipeline_mode = #tpu.pipeline_mode<synchronous>, transform_indices = @transform_2, window_bounds = array<i64: 1, 128>}, {pipeline_mode = #tpu.pipeline_mode<synchronous>, transform_indices = @transform_3, window_bounds = array<i64: 128, 128>}, {pipeline_mode = #tpu.pipeline_mode<synchronous>, transform_indices = @transform_4, window_bounds = array<i64: 1, 128>}, {pipeline_mode = #tpu.pipeline_mode<synchronous>, transform_indices = @transform_5, window_bounds = array<i64: 128, 64>}, {pipeline_mode = #tpu.pipeline_mode<synchronous>, transform_indices = @transform_6, window_bounds = array<i64: 1, 64>}, {pipeline_mode = #tpu.pipeline_mode<synchronous>, transform_indices = @transform_7, window_bounds = array<i64: 16, 128>}, {pipeline_mode = #tpu.pipeline_mode<synchronous>, transform_indices = @transform_8, window_bounds = array<i64: 128, 128>}, {transform_indices = @transform_9, window_bounds = array<i64: 1, 128, 2560>}, {transform_indices = @transform_10, window_bounds = array<i64: 1, 2048, 128>}, {transform_indices = @transform_11, window_bounds = array<i64: 1, 1, 3200>}, {pipeline_mode = #tpu.pipeline_mode<synchronous>, transform_indices = @transform_12, window_bounds = array<i64: 2, 64>}]} {
    %c0_i32 = arith.constant 0 : i32
    %0 = arith.cmpi eq, %arg0, %c0_i32 : i32
    %1 = arith.extui %0 : i1 to i32
    %c0_i32_0 = arith.constant 0 : i32
    %2 = arith.cmpi ne, %1, %c0_i32_0 : i32
    scf.if %2 {
      %c0_56 = arith.constant 0 : index
      %c0_57 = arith.constant 0 : index
      %116 = vector.load %arg1[%c0_56, %c0_57] : memref<16x64xbf16, #tpu.memory_space<vmem>>, vector<16x64xbf16>
      %c0_58 = arith.constant 0 : index
      %c0_59 = arith.constant 0 : index
      %117 = vector.load %arg2[%c0_58, %c0_59] : memref<64x128xbf16, #tpu.memory_space<vmem>>, vector<64x128xbf16>
      %cst_60 = arith.constant dense<0.000000e+00> : vector<16x128xf32>
      %118 = tpu.matmul %116, %117, %cst_60 {dimension_numbers = #tpu.dot_dimension_numbers<[1], [0], [0], [1], [0, 0, 1, 1], [], []>} : vector<16x64xbf16>, vector<64x128xbf16>, vector<16x128xf32> -> vector<16x128xf32>
      %c0_61 = arith.constant 0 : index
      %c0_62 = arith.constant 0 : index
      %119 = vector.load %arg3[%c0_61, %c0_62] : memref<1x128xf32, #tpu.memory_space<vmem>>, vector<1x128xf32>
      %120 = vector.broadcast %119 : vector<1x128xf32> to vector<16x128xf32>
      %121 = arith.addf %118, %120 : vector<16x128xf32>
      %cst_63 = arith.constant 0.000000e+00 : f32
      %122 = vector.broadcast %cst_63 : f32 to vector<16x128xf32>
      %123 = arith.maximumf %121, %122 : vector<16x128xf32>
      %124 = arith.truncf %123 : vector<16x128xf32> to vector<16x128xbf16>
      %c0_64 = arith.constant 0 : index
      %c0_65 = arith.constant 0 : index
      %125 = vector.load %arg4[%c0_64, %c0_65] : memref<128x128xbf16, #tpu.memory_space<vmem>>, vector<128x128xbf16>
      %cst_66 = arith.constant dense<0.000000e+00> : vector<16x128xf32>
      %126 = tpu.matmul %124, %125, %cst_66 {dimension_numbers = #tpu.dot_dimension_numbers<[1], [0], [0], [1], [0, 0, 1, 1], [], []>} : vector<16x128xbf16>, vector<128x128xbf16>, vector<16x128xf32> -> vector<16x128xf32>
      %c0_67 = arith.constant 0 : index
      %c0_68 = arith.constant 0 : index
      %127 = vector.load %arg5[%c0_67, %c0_68] : memref<1x128xf32, #tpu.memory_space<vmem>>, vector<1x128xf32>
      %128 = vector.broadcast %127 : vector<1x128xf32> to vector<16x128xf32>
      %129 = arith.addf %126, %128 : vector<16x128xf32>
      %cst_69 = arith.constant 0.000000e+00 : f32
      %130 = vector.broadcast %cst_69 : f32 to vector<16x128xf32>
      %131 = arith.maximumf %129, %130 : vector<16x128xf32>
      %c0_70 = arith.constant 0 : index
      %c0_71 = arith.constant 0 : index
      %132 = vector.load %arg14[%c0_70, %c0_71] : memref<16x128xf32, #tpu.memory_space<vmem>>, vector<16x128xf32>
      tpu.vector_store %arg14[%c0_70, %c0_71], %131 {strides = array<i32>} : memref<16x128xf32, #tpu.memory_space<vmem>>, vector<16x128xf32>,
    } else {
    }
    %c0 = arith.constant 0 : index
    %c0_1 = arith.constant 0 : index
    %3 = vector.load %arg14[%c0, %c0_1] : memref<16x128xf32, #tpu.memory_space<vmem>>, vector<16x128xf32>
    %4 = arith.truncf %3 : vector<16x128xf32> to vector<16x128xbf16>
    %c0_2 = arith.constant 0 : index
    %c0_3 = arith.constant 0 : index
    %c0_4 = arith.constant 0 : index
    %5 = vector.load %arg10[%c0_2, %c0_3, %c0_4] : memref<1x128x2560xbf16, #tpu.memory_space<vmem>>, vector<1x128x384xbf16>
    %6 = vector.shape_cast %5 : vector<1x128x384xbf16> to vector<128x384xbf16>
    %cst = arith.constant dense<0.000000e+00> : vector<16x384xf32>
    %7 = tpu.matmul %4, %6, %cst {dimension_numbers = #tpu.dot_dimension_numbers<[1], [0], [0], [1], [0, 0, 1, 1], [], []>} : vector<16x128xbf16>, vector<128x384xbf16>, vector<16x384xf32> -> vector<16x384xf32>
    %c0_5 = arith.constant 0 : index
    %c0_6 = arith.constant 0 : index
    %c0_7 = arith.constant 0 : index
    %8 = vector.load %arg12[%c0_5, %c0_6, %c0_7] : memref<1x1x3200xf32, #tpu.memory_space<vmem>>, vector<1x1x384xf32>
    %9 = vector.shape_cast %8 : vector<1x1x384xf32> to vector<1x384xf32>
    %10 = vector.broadcast %9 : vector<1x384xf32> to vector<16x384xf32>
    %11 = arith.addf %7, %10 : vector<16x384xf32>
    %12 = vector.extract_strided_slice %11 {offsets = [0, 0], sizes = [16, 128], strides = [1, 1]} : vector<16x384xf32> to vector<16x128xf32>
    %13 = vector.extract_strided_slice %11 {offsets = [0, 128], sizes = [16, 128], strides = [1, 1]} : vector<16x384xf32> to vector<16x128xf32>
    %14 = vector.extract_strided_slice %11 {offsets = [0, 256], sizes = [16, 128], strides = [1, 1]} : vector<16x384xf32> to vector<16x128xf32>
    %c0_8 = arith.constant 0 : index
    %c0_9 = arith.constant 0 : index
    %15 = vector.load %arg9[%c0_8, %c0_9] : memref<128x128xf32, #tpu.memory_space<vmem>>, vector<128x128xf32>
    %16 = tpu.concatenate %13, %13, %13, %13, %13, %13, %13, %13 in 0 : vector<16x128xf32>, vector<16x128xf32>, vector<16x128xf32>, vector<16x128xf32>, vector<16x128xf32>, vector<16x128xf32>, vector<16x128xf32>, vector<16x128xf32> -> vector<128x128xf32>
    %17 = arith.mulf %16, %15 : vector<128x128xf32>
    %18 = tpu.concatenate %14, %14, %14, %14, %14, %14, %14, %14 in 0 : vector<16x128xf32>, vector<16x128xf32>, vector<16x128xf32>, vector<16x128xf32>, vector<16x128xf32>, vector<16x128xf32>, vector<16x128xf32>, vector<16x128xf32> -> vector<128x128xf32>
    %19 = arith.mulf %18, %15 : vector<128x128xf32>
    %cst_10 = arith.constant dense<0.000000e+00> : vector<16x128xf32>
    %20 = tpu.matmul %12, %17, %cst_10 {dimension_numbers = #tpu.dot_dimension_numbers<[1], [1], [0], [0], [0, 0, 1, 0], [], []>} : vector<16x128xf32>, vector<128x128xf32>, vector<16x128xf32> -> vector<16x128xf32>
    %c0_11 = arith.constant 0 : index
    %c0_12 = arith.constant 0 : index
    %21 = vector.load %arg8[%c0_11, %c0_12] : memref<16x128xf32, #tpu.memory_space<vmem>>, vector<16x128xf32>
    %22 = arith.addf %20, %21 : vector<16x128xf32>
    %cst_13 = arith.constant dense<0xFF800000> : vector<16xf32>
    %23 = vector.multi_reduction <maximumf>, %22, %cst_13 [1] : vector<16x128xf32> to vector<16xf32>
    %24 = vector.shape_cast %23 : vector<16xf32> to vector<16x1xf32>
    %25 = vector.broadcast %24 : vector<16x1xf32> to vector<16x128xf32>
    %26 = arith.subf %22, %25 : vector<16x128xf32>
    %27 = math.exp %26 : vector<16x128xf32>
    %cst_14 = arith.constant dense<0.000000e+00> : vector<16x128xf32>
    %28 = tpu.matmul %27, %19, %cst_14 {dimension_numbers = #tpu.dot_dimension_numbers<[1], [0], [0], [1], [0, 0, 1, 1], [], []>} : vector<16x128xf32>, vector<128x128xf32>, vector<16x128xf32> -> vector<16x128xf32>
    %cst_15 = arith.constant dense<0.000000e+00> : vector<16x128xf32>
    %29 = tpu.matmul %27, %15, %cst_15 {dimension_numbers = #tpu.dot_dimension_numbers<[1], [0], [0], [1], [0, 0, 1, 1], [], []>} : vector<16x128xf32>, vector<128x128xf32>, vector<16x128xf32> -> vector<16x128xf32>
    %30 = tpu.reciprocal %29 {approx = true} : vector<16x128xf32> -> vector<16x128xf32>
    %31 = arith.mulf %28, %30 : vector<16x128xf32>
    %32 = arith.truncf %31 : vector<16x128xf32> to vector<16x128xbf16>
    %c0_16 = arith.constant 0 : index
    %c0_17 = arith.constant 0 : index
    %c384 = arith.constant 384 : index
    %33 = vector.load %arg10[%c0_16, %c0_17, %c384] : memref<1x128x2560xbf16, #tpu.memory_space<vmem>>, vector<1x128x128xbf16>
    %34 = vector.shape_cast %33 : vector<1x128x128xbf16> to vector<128x128xbf16>
    %cst_18 = arith.constant dense<0.000000e+00> : vector<16x128xf32>
    %35 = tpu.matmul %32, %34, %cst_18 {dimension_numbers = #tpu.dot_dimension_numbers<[1], [0], [0], [1], [0, 0, 1, 1], [], []>} : vector<16x128xbf16>, vector<128x128xbf16>, vector<16x128xf32> -> vector<16x128xf32>
    %c0_19 = arith.constant 0 : index
    %c0_20 = arith.constant 0 : index
    %c384_21 = arith.constant 384 : index
    %36 = vector.load %arg12[%c0_19, %c0_20, %c384_21] : memref<1x1x3200xf32, #tpu.memory_space<vmem>>, vector<1x1x128xf32>
    %37 = vector.shape_cast %36 : vector<1x1x128xf32> to vector<1x128xf32>
    %38 = vector.broadcast %37 : vector<1x128xf32> to vector<16x128xf32>
    %39 = arith.addf %35, %38 : vector<16x128xf32>
    %40 = arith.addf %3, %39 : vector<16x128xf32>
    %c0_22 = arith.constant 0 : index
    %c0_23 = arith.constant 0 : index
    %c512 = arith.constant 512 : index
    %41 = vector.load %arg12[%c0_22, %c0_23, %c512] : memref<1x1x3200xf32, #tpu.memory_space<vmem>>, vector<1x1x128xf32>
    %42 = vector.shape_cast %41 : vector<1x1x128xf32> to vector<1x128xf32>
    %c0_24 = arith.constant 0 : index
    %c0_25 = arith.constant 0 : index
    %c640 = arith.constant 640 : index
    %43 = vector.load %arg12[%c0_24, %c0_25, %c640] : memref<1x1x3200xf32, #tpu.memory_space<vmem>>, vector<1x1x128xf32>
    %44 = vector.shape_cast %43 : vector<1x1x128xf32> to vector<1x128xf32>
    %cst_26 = arith.constant dense<0.000000e+00> : vector<16xf32>
    %45 = vector.multi_reduction <add>, %40, %cst_26 [1] : vector<16x128xf32> to vector<16xf32>
    %46 = vector.shape_cast %45 : vector<16xf32> to vector<16x1xf32>
    %cst_27 = arith.constant 1.280000e+02 : f32
    %47 = vector.broadcast %cst_27 : f32 to vector<16x1xf32>
    %48 = arith.divf %46, %47 : vector<16x1xf32>
    %49 = vector.broadcast %48 : vector<16x1xf32> to vector<16x128xf32>
    %50 = arith.subf %40, %49 : vector<16x128xf32>
    %51 = arith.mulf %50, %50 : vector<16x128xf32>
    %cst_28 = arith.constant dense<0.000000e+00> : vector<16xf32>
    %52 = vector.multi_reduction <add>, %51, %cst_28 [1] : vector<16x128xf32> to vector<16xf32>
    %53 = vector.shape_cast %52 : vector<16xf32> to vector<16x1xf32>
    %cst_29 = arith.constant 1.280000e+02 : f32
    %54 = vector.broadcast %cst_29 : f32 to vector<16x1xf32>
    %55 = arith.divf %53, %54 : vector<16x1xf32>
    %56 = vector.broadcast %48 : vector<16x1xf32> to vector<16x128xf32>
    %57 = arith.subf %40, %56 : vector<16x128xf32>
    %cst_30 = arith.constant 9.99999974E-6 : f32
    %58 = vector.broadcast %cst_30 : f32 to vector<16x1xf32>
    %59 = arith.addf %55, %58 : vector<16x1xf32>
    %60 = math.rsqrt %59 : vector<16x1xf32>
    %61 = vector.broadcast %60 : vector<16x1xf32> to vector<16x128xf32>
    %62 = arith.mulf %57, %61 : vector<16x128xf32>
    %63 = vector.broadcast %42 : vector<1x128xf32> to vector<16x128xf32>
    %64 = arith.mulf %62, %63 : vector<16x128xf32>
    %65 = vector.broadcast %44 : vector<1x128xf32> to vector<16x128xf32>
    %66 = arith.addf %64, %65 : vector<16x128xf32>
    %67 = arith.truncf %66 : vector<16x128xf32> to vector<16x128xbf16>
    %c0_31 = arith.constant 0 : index
    %c0_32 = arith.constant 0 : index
    %c512_33 = arith.constant 512 : index
    %68 = vector.load %arg10[%c0_31, %c0_32, %c512_33] : memref<1x128x2560xbf16, #tpu.memory_space<vmem>>, vector<1x128x2048xbf16>
    %69 = vector.shape_cast %68 : vector<1x128x2048xbf16> to vector<128x2048xbf16>
    %cst_34 = arith.constant dense<0.000000e+00> : vector<16x2048xf32>
    %70 = tpu.matmul %67, %69, %cst_34 {dimension_numbers = #tpu.dot_dimension_numbers<[1], [0], [0], [1], [0, 0, 1, 1], [], []>} : vector<16x128xbf16>, vector<128x2048xbf16>, vector<16x2048xf32> -> vector<16x2048xf32>
    %c0_35 = arith.constant 0 : index
    %c0_36 = arith.constant 0 : index
    %c768 = arith.constant 768 : index
    %71 = vector.load %arg12[%c0_35, %c0_36, %c768] : memref<1x1x3200xf32, #tpu.memory_space<vmem>>, vector<1x1x2048xf32>
    %72 = vector.shape_cast %71 : vector<1x1x2048xf32> to vector<1x2048xf32>
    %73 = vector.broadcast %72 : vector<1x2048xf32> to vector<16x2048xf32>
    %74 = arith.addf %70, %73 : vector<16x2048xf32>
    %cst_37 = arith.constant 0.000000e+00 : f32
    %75 = vector.broadcast %cst_37 : f32 to vector<16x2048xf32>
    %76 = arith.maximumf %74, %75 : vector<16x2048xf32>
    %77 = arith.truncf %76 : vector<16x2048xf32> to vector<16x2048xbf16>
    %c0_38 = arith.constant 0 : index
    %c0_39 = arith.constant 0 : index
    %c0_40 = arith.constant 0 : index
    %78 = vector.load %arg11[%c0_38, %c0_39, %c0_40] : memref<1x2048x128xbf16, #tpu.memory_space<vmem>>, vector<1x2048x128xbf16>
    %79 = vector.shape_cast %78 : vector<1x2048x128xbf16> to vector<2048x128xbf16>
    %cst_41 = arith.constant dense<0.000000e+00> : vector<16x128xf32>
    %80 = tpu.matmul %77, %79, %cst_41 {dimension_numbers = #tpu.dot_dimension_numbers<[1], [0], [0], [1], [0, 0, 1, 1], [], []>} : vector<16x2048xbf16>, vector<2048x128xbf16>, vector<16x128xf32> -> vector<16x128xf32>
    %c0_42 = arith.constant 0 : index
    %c0_43 = arith.constant 0 : index
    %c2816 = arith.constant 2816 : index
    %81 = vector.load %arg12[%c0_42, %c0_43, %c2816] : memref<1x1x3200xf32, #tpu.memory_space<vmem>>, vector<1x1x128xf32>
    %82 = vector.shape_cast %81 : vector<1x1x128xf32> to vector<1x128xf32>
    %83 = vector.broadcast %82 : vector<1x128xf32> to vector<16x128xf32>
    %84 = arith.addf %80, %83 : vector<16x128xf32>
    %85 = arith.addf %66, %84 : vector<16x128xf32>
    %c0_44 = arith.constant 0 : index
    %c0_45 = arith.constant 0 : index
    %c2944 = arith.constant 2944 : index
    %86 = vector.load %arg12[%c0_44, %c0_45, %c2944] : memref<1x1x3200xf32, #tpu.memory_space<vmem>>, vector<1x1x128xf32>
    %87 = vector.shape_cast %86 : vector<1x1x128xf32> to vector<1x128xf32>
    %c0_46 = arith.constant 0 : index
    %c0_47 = arith.constant 0 : index
    %c3072 = arith.constant 3072 : index
    %88 = vector.load %arg12[%c0_46, %c0_47, %c3072] : memref<1x1x3200xf32, #tpu.memory_space<vmem>>, vector<1x1x128xf32>
    %89 = vector.shape_cast %88 : vector<1x1x128xf32> to vector<1x128xf32>
    %cst_48 = arith.constant dense<0.000000e+00> : vector<16xf32>
    %90 = vector.multi_reduction <add>, %85, %cst_48 [1] : vector<16x128xf32> to vector<16xf32>
    %91 = vector.shape_cast %90 : vector<16xf32> to vector<16x1xf32>
    %cst_49 = arith.constant 1.280000e+02 : f32
    %92 = vector.broadcast %cst_49 : f32 to vector<16x1xf32>
    %93 = arith.divf %91, %92 : vector<16x1xf32>
    %94 = vector.broadcast %93 : vector<16x1xf32> to vector<16x128xf32>
    %95 = arith.subf %85, %94 : vector<16x128xf32>
    %96 = arith.mulf %95, %95 : vector<16x128xf32>
    %cst_50 = arith.constant dense<0.000000e+00> : vector<16xf32>
    %97 = vector.multi_reduction <add>, %96, %cst_50 [1] : vector<16x128xf32> to vector<16xf32>
    %98 = vector.shape_cast %97 : vector<16xf32> to vector<16x1xf32>
    %cst_51 = arith.constant 1.280000e+02 : f32
    %99 = vector.broadcast %cst_51 : f32 to vector<16x1xf32>
    %100 = arith.divf %98, %99 : vector<16x1xf32>
    %101 = vector.broadcast %93 : vector<16x1xf32> to vector<16x128xf32>
    %102 = arith.subf %85, %101 : vector<16x128xf32>
    %cst_52 = arith.constant 9.99999974E-6 : f32
    %103 = vector.broadcast %cst_52 : f32 to vector<16x1xf32>
    %104 = arith.addf %100, %103 : vector<16x1xf32>
    %105 = math.rsqrt %104 : vector<16x1xf32>
    %106 = vector.broadcast %105 : vector<16x1xf32> to vector<16x128xf32>
    %107 = arith.mulf %102, %106 : vector<16x128xf32>
    %108 = vector.broadcast %87 : vector<1x128xf32> to vector<16x128xf32>
    %109 = arith.mulf %107, %108 : vector<16x128xf32>
    %110 = vector.broadcast %89 : vector<1x128xf32> to vector<16x128xf32>
    %111 = arith.addf %109, %110 : vector<16x128xf32>
    %c0_53 = arith.constant 0 : index
    %c0_54 = arith.constant 0 : index
    %112 = vector.load %arg14[%c0_53, %c0_54] : memref<16x128xf32, #tpu.memory_space<vmem>>, vector<16x128xf32>
    tpu.vector_store %arg14[%c0_53, %c0_54], %111 {strides = array<i32>} : memref<16x128xf32, #tpu.memory_space<vmem>>, vector<16x128xf32>,
    %c1_i32 = arith.constant 1 : i32
    %113 = arith.cmpi eq, %arg0, %c1_i32 : i32
    %114 = arith.extui %113 : i1 to i32
    %c0_i32_55 = arith.constant 0 : i32
    %115 = arith.cmpi ne, %114, %c0_i32_55 : i32
    scf.if %115 {
      %116 = vector.shape_cast %111 : vector<16x128xf32> to vector<2x8x128xf32>
      %117 = vector.extract_strided_slice %116 {offsets = [0, 7, 0], sizes = [2, 1, 128], strides = [1, 1, 1]} : vector<2x8x128xf32> to vector<2x1x128xf32>
      %118 = vector.shape_cast %117 : vector<2x1x128xf32> to vector<2x128xf32>
      %119 = arith.truncf %118 : vector<2x128xf32> to vector<2x128xbf16>
      %c0_56 = arith.constant 0 : index
      %c0_57 = arith.constant 0 : index
      %120 = vector.load %arg6[%c0_56, %c0_57] : memref<128x64xbf16, #tpu.memory_space<vmem>>, vector<128x64xbf16>
      %cst_58 = arith.constant dense<0.000000e+00> : vector<2x64xf32>
      %121 = tpu.matmul %119, %120, %cst_58 {dimension_numbers = #tpu.dot_dimension_numbers<[1], [0], [0], [1], [0, 0, 1, 1], [], []>} : vector<2x128xbf16>, vector<128x64xbf16>, vector<2x64xf32> -> vector<2x64xf32>
      %c0_59 = arith.constant 0 : index
      %c0_60 = arith.constant 0 : index
      %122 = vector.load %arg7[%c0_59, %c0_60] : memref<1x64xf32, #tpu.memory_space<vmem>>, vector<1x64xf32>
      %123 = vector.broadcast %122 : vector<1x64xf32> to vector<2x64xf32>
      %124 = arith.addf %121, %123 : vector<2x64xf32>
      %c0_61 = arith.constant 0 : index
      %c0_62 = arith.constant 0 : index
      %125 = vector.load %arg13[%c0_61, %c0_62] : memref<2x64xf32, #tpu.memory_space<vmem>>, vector<2x64xf32>
      tpu.vector_store %arg13[%c0_61, %c0_62], %124 {strides = array<i32>} : memref<2x64xf32, #tpu.memory_space<vmem>>, vector<2x64xf32>,
    } else {
    }
    return
  }
  func.func @transform_0(%arg0: i32) -> (i32, i32) {
    %c0_i32 = arith.constant 0 : i32
    %c0_i32_0 = arith.constant 0 : i32
    %c0_i32_1 = arith.constant 0 : i32
    return %c0_i32, %c0_i32_0 : i32, i32
  }
  func.func @transform_1(%arg0: i32) -> (i32, i32) {
    %c0_i32 = arith.constant 0 : i32
    %c0_i32_0 = arith.constant 0 : i32
    %c0_i32_1 = arith.constant 0 : i32
    return %c0_i32, %c0_i32_0 : i32, i32
  }
  func.func @transform_2(%arg0: i32) -> (i32, i32) {
    %c0_i32 = arith.constant 0 : i32
    %c0_i32_0 = arith.constant 0 : i32
    %c0_i32_1 = arith.constant 0 : i32
    return %c0_i32, %c0_i32_0 : i32, i32
  }
  func.func @transform_3(%arg0: i32) -> (i32, i32) {
    %c0_i32 = arith.constant 0 : i32
    %c0_i32_0 = arith.constant 0 : i32
    %c0_i32_1 = arith.constant 0 : i32
    return %c0_i32, %c0_i32_0 : i32, i32
  }
  func.func @transform_4(%arg0: i32) -> (i32, i32) {
    %c0_i32 = arith.constant 0 : i32
    %c0_i32_0 = arith.constant 0 : i32
    %c0_i32_1 = arith.constant 0 : i32
    return %c0_i32, %c0_i32_0 : i32, i32
  }
  func.func @transform_5(%arg0: i32) -> (i32, i32) {
    %c0_i32 = arith.constant 0 : i32
    %c0_i32_0 = arith.constant 0 : i32
    %c0_i32_1 = arith.constant 0 : i32
    return %c0_i32, %c0_i32_0 : i32, i32
  }
  func.func @transform_6(%arg0: i32) -> (i32, i32) {
    %c0_i32 = arith.constant 0 : i32
    %c0_i32_0 = arith.constant 0 : i32
    %c0_i32_1 = arith.constant 0 : i32
    return %c0_i32, %c0_i32_0 : i32, i32
  }
  func.func @transform_7(%arg0: i32) -> (i32, i32) {
    %c0_i32 = arith.constant 0 : i32
    %c0_i32_0 = arith.constant 0 : i32
    %c0_i32_1 = arith.constant 0 : i32
    return %c0_i32, %c0_i32_0 : i32, i32
  }
  func.func @transform_8(%arg0: i32) -> (i32, i32) {
    %c0_i32 = arith.constant 0 : i32
    %c0_i32_0 = arith.constant 0 : i32
    %c0_i32_1 = arith.constant 0 : i32
    return %c0_i32, %c0_i32_0 : i32, i32
  }
  func.func @transform_9(%arg0: i32) -> (i32, i32, i32) {
    %c0_i32 = arith.constant 0 : i32
    %c0_i32_0 = arith.constant 0 : i32
    %c0_i32_1 = arith.constant 0 : i32
    return %arg0, %c0_i32, %c0_i32_0 : i32, i32, i32
  }
  func.func @transform_10(%arg0: i32) -> (i32, i32, i32) {
    %c0_i32 = arith.constant 0 : i32
    %c0_i32_0 = arith.constant 0 : i32
    %c0_i32_1 = arith.constant 0 : i32
    return %arg0, %c0_i32, %c0_i32_0 : i32, i32, i32
  }
  func.func @transform_11(%arg0: i32) -> (i32, i32, i32) {
    %c0_i32 = arith.constant 0 : i32
    %c0_i32_0 = arith.constant 0 : i32
    %c0_i32_1 = arith.constant 0 : i32
    return %arg0, %c0_i32, %c0_i32_0 : i32, i32, i32
  }
  func.func @transform_12(%arg0: i32) -> (i32, i32) {
    %c0_i32 = arith.constant 0 : i32
    %c0_i32_0 = arith.constant 0 : i32
    %c0_i32_1 = arith.constant 0 : i32
    return %c0_i32, %c0_i32_0 : i32, i32
  }
}

</mosaic_0001>

<bundles_post_ra>
// kernel: weather_forecaster_forward.1
= control target key start
LH: loop header
LB: loop body
LE: loop exit
PB: predicated region body
PF: predicated region fallthrough
CT: control target
= control target key end

     0   :  { %s7040_s0 = inlined_call_operand.vmem [shape: bf16[16,64], index: 0, kind: input, shape index: {}]   ;;  %s7041_s1 = inlined_call_operand.hbm [shape: bf16[64,128], index: 1, kind: input, shape index: {}]   ;;  %s7042_s2 = inlined_call_operand.hbm [shape: f32[1,128], index: 2, kind: input, shape index: {}]   ;;  %s7043_s3 = inlined_call_operand.hbm [shape: bf16[128,128], index: 3, kind: input, shape index: {}]   ;;  %s7044_s4 = inlined_call_operand.hbm [shape: f32[1,128], index: 4, kind: input, shape index: {}]   ;;  %s7045_s5 = inlined_call_operand.vmem [shape: bf16[128,64], index: 5, kind: input, shape index: {}]   ;;  %s7046_s6 = inlined_call_operand.hbm [shape: f32[1,64], index: 6, kind: input, shape index: {}]   ;;  %s7047_s7 = inlined_call_operand.hbm [shape: f32[16,128], index: 7, kind: input, shape index: {}]   ;;  %s7048_s8 = inlined_call_operand.hbm [shape: f32[128,128], index: 8, kind: input, shape index: {}]   ;;  %s7049_s9 = inlined_call_operand.hbm [shape: bf16[2,128,2560], index: 9, kind: input, shape index: {}]   ;;  %s7050_s10 = inlined_call_operand.hbm [shape: bf16[2,2048,128], index: 10, kind: input, shape index: {}]   ;;  %s7051_s11 = inlined_call_operand.hbm [shape: f32[2,1,3200], index: 11, kind: input, shape index: {}]   ;;  %s7052_s12 = inlined_call_operand.vmem [shape: f32[2,64], index: 12, kind: output, shape index: {}]  }
   0x1   :  { %7067 = sst [smem:[#allocation28_spill]] %s7041_s1 }
   0x2   :  { %7068 = sst [smem:[#allocation29_spill]] %s7042_s2 }
   0x3   :  { %7069 = sst [smem:[#allocation30_spill]] %s7044_s4 }
   0x4   :  { %7070 = sst [smem:[#allocation31_spill]] %s7047_s7 }
   0x5   :  { %17 = vsyncpa [#allocation4], 0 }
   0x6   :  { %18 = vsyncpa [#allocation6], 0 }
   0x7   :  { %19 = vsyncpa [#allocation9], 0 }
   0x8   :  { %20 = vsyncpa [#allocation12], 0 }
   0x9   :  { %21 = vsyncpa [#allocation15], 0 }
   0xa   :  { %23 = vsyncpa [#allocation15 + $0x1], 0 }
   0xb   :  { %24 = vsyncpa [#allocation18], 0 }
   0xc   :  { %26 = vsyncpa [#allocation18 + $0x1], 0  ;;  %s6206_s21 = smov 0   ;;  %s6208_s22 = smov 0  }
   0xd   :  { %s6210_s23 = smov 0   ;;  %s6212_s24 = smov 0  }
   0xe LB: > { %7071 = sst [smem:[#allocation25_spill]] %s6112_s23  ;;  %s6118_s25 = smov [#allocation5]   ;;  %s6116_s24 = sphi %s6212_s24, %s7102_s24   ;;  %s6112_s23 = sphi %s6210_s23, %s7104_s23   ;;  %s6108_s22 = sphi %s6208_s22, %s7106_s22   ;;  %s6104_s21 = sphi %s6206_s21, %s7105_s21  }
   0xf   : > { %s354_s26 = sshll.u32 %s6118_s25, 4  ;;  %s6227_s27 = sadd.s32 4294967295, %s6116_s24   ;;  %s355_s26 = int_to_ptr.vmem [resolvable:$true] %s354_s26 }
  0x10   : > { %p4443_p0 = scmp.ge.s32.totalorder %s6116_s24, 1  ;;  %p7053_p1 = scmp.eq.s32.totalorder %s6227_s27, 0 }
  0x11   : > { %p325_p2 = scmp.lt.s32.totalorder %s6116_s24, 3  ;;  %s6119_s29 = smov [#allocation8]  }
  0x12   : > { %s378_s30 = sshll.u32 %s6119_s29, 4  ;;  %s6120_s13 = smov [#allocation11]   ;;  %s379_s30 = int_to_ptr.vmem [resolvable:$true] %s378_s30 }
  0x13   : > { %p6233_p4 = pnand %p4443_p0, %p325_p2  ;;  %s402_s14 = sshll.u32 %s6120_s13, 4  ;;  %s6245_s14 = int_to_ptr.vmem [resolvable:$true] %s402_s14 }
  0x14   : > { %s5807_s17 = scalar_lea.vmem %s355_s26, 16  ;;  %s5814_s18 = scalar_lea.vmem %s355_s26, 32 }
  0x15   : > { %s7072_s28 = scalar_select %p6233_p4, 1, 0 }
  0x16   : > { %p5298_p5 = pneg %p6233_p4  ;;  %p5808_p8 = scmp.ne.s32.totalorder %s355_s26, %s5807_s17 }
  0x17   : > { %p5815_p11 = scmp.lt.s32.totalorder %s355_s26, %s355_s26  ;;  %p5816_p12 = scmp.lt.s32.totalorder %s5814_s18, %s5807_s17 }
  0x18   : > { %p6241_p6 = pnand %p5298_p5, %p7053_p1 }
  0x19   : > { %p5817_p13 = por %p5816_p12, %p5815_p11 }
  0x1a   : > { %s7073_s15 = scalar_select %p6241_p6, 1, 0 }
  0x1b   : > { %p6249_p7 = pneg %p6241_p6 }
  0x1d   : > { %s7074_s16 = scalar_select %p6249_p7, 1, 0 }
  0x1e   : > { %p5810_p9 = pnand %p5808_p8, %p6249_p7 }
  0x20   : > { %p5811_p10 = pneg %p5810_p9 }
  0x22   : > { %p5818_p0 = pnand %p5817_p13, %p5811_p10 }
  0x24   : > { %5821 = shalt.err (!%p5818_p0)
}
  0x25   : > { %s7075_s2 = sld [smem:[#allocation29_spill]]  ;;  %s5833_s25 = scalar_lea.vmem %s379_s30, 16 }
  0x26   : > { %p5834_p2 = scmp.ne.s32.totalorder %s379_s30, %s5833_s25  ;;  %s5840_s29 = scalar_lea.vmem %s379_s30, 32 }
  0x27   : > { %p5841_p8 = scmp.lt.s32.totalorder %s379_s30, %s379_s30  ;;  %p5842_p9 = scmp.lt.s32.totalorder %s5840_s29, %s5833_s25 }
  0x28   : > { %p5836_p5 = pnand %p5834_p2, %p6249_p7 }
  0x29   : > { %p5843_p1 = por %p5842_p9, %p5841_p8 }
  0x2a   : > { %p5837_p3 = pneg %p5836_p5 }
  0x2b   : > { %5304 = dma.hbm_to_vmem [thread:$0]  (!%p6241_p6), %s7075_s2, 16, %s355_s26, [#allocation6]  }
  0x2c   : > { %p5844_p4 = pnand %p5843_p1, %p5837_p3 }
  0x2e   : > { %5847 = shalt.err (!%p5844_p4)
}
  0x2f   : > { %s7076_s4 = sld [smem:[#allocation30_spill]]  ;;  %s5859_s26 = scalar_lea.vmem %s6245_s14, 256 }
  0x30   : > { %p5860_p10 = scmp.ne.s32.totalorder %s6245_s14, %s5859_s26  ;;  %p5867_p13 = scmp.lt.s32.totalorder %s6245_s14, %s6245_s14 }
  0x31   : > { %p5868_p0 = scmp.lt.s32.totalorder %s5859_s26, %s5859_s26 }
  0x32   : > { %p5862_p11 = pnand %p5860_p10, %p6249_p7 }
  0x33   : > { %p5869_p1 = por %p5868_p0, %p5867_p13 }
  0x34   : > { %p5863_p12 = pneg %p5862_p11 }
  0x35   : > { %5310 = dma.hbm_to_vmem [thread:$0]  (!%p6241_p6), %s7076_s4, 16, %s379_s30, [#allocation9]  }
  0x36   : > { %p5870_p3 = pnand %p5869_p1, %p5863_p12 }
  0x38   : > { %5873 = shalt.err (!%p5870_p3)
}
  0x39   : > { %s7055_s18 = smov 128   ;;  %s7056_s30 = smov 8  }
  0x3a   : > { %s7077_s7 = sld [smem:[#allocation31_spill]]  ;;  %s6283_s25 = sadd.s32 1, %s6116_s24  }
  0x3b   : > { %7078 = sst [smem:[#allocation26_spill]] %s6283_s25  ;;  %s225_s29 = ssub.s32 %s6116_s24, %s6283_s25 }
  0x3c   : > { %s228_s13 = sadd.s32 1, %s6112_s23  ;;  %p226_p4 = scmp.eq.s32.totalorder %s225_s29, 0 }
  0x3d   : > { %p235_p2 = scmp.ne.s32.totalorder %s6112_s23, %s6108_s22  ;;  %p236_p5 = scmp.eq.s32.totalorder %s6116_s24, 0 }
  0x3e   : > { %p241_p8 = scmp.ne.s32.totalorder %s6108_s22, %s6104_s21  ;;  %p7080_p10 = scmp.eq.s32.totalorder %s6227_s27, 0 }
  0x3f   : > { %s6294_s17 = scalar_select %p226_p4, %s6112_s23, %s228_s13  }
  0x40   : > { %5316 = dma.hbm_to_vmem [thread:$0]  (!%p6241_p6), %s7077_s7, 256, %s6245_s14, [#allocation12], %s7055_s18, %s7055_s18, %s7056_s30  }
  0x41   : > { %7079 = sst [smem:[#allocation27_spill]] %s6294_s17  ;;  %p237_p9 = por %p236_p5, %p235_p2 }
  0x42   : > { %p6298_p11 = por %p7080_p10, %p241_p8  ;;  %p5337_p12 = scmp.lt.s32.totalorder %s6116_s24, 2 }
  0x43   : > { %s429_s14 = sand.u32 1, %s6116_s24   ;;  %s6305_s19 = sand.u32 1, %s6112_s23  }
  0x44   : > { %s7081_s26 = scalar_select %p6298_p11, 1, 0 }
  0x45   : > { %s5258_s20 = smul.u32 1280, %s6305_s19  ;;  %p6308_p13 = pnand %p5337_p12, %p237_p9 }
  0x46   : > { %s5259_s21 = smul.u32 20480, %s6116_s24  ;;  %s6320_s7 = scalar_lea.sflag [#allocation15], %s429_s14 }
  0x47   : > { %s433_s2 = scalar_lea.vmem [#allocation14], %s5258_s20  ;;  %p6326_p1 = pneg %p6308_p13 }
  0x48   : > { %s6316_s30 = scalar_lea.hbm %s7049_s9, %s5259_s21  ;;  %s440_s4 = sshll.u32 %s433_s2, 4  ;;  %s6318_s4 = int_to_ptr.vmem [resolvable:$true] %s440_s4 }
  0x49   : > { %s5874_s17 = scalar_lea.hbm %s6316_s30, 20480  ;;  %s5879_s20 = scalar_lea.hbm %s7049_s9, 40960 }
  0x4a   : > { %p5875_p0 = scmp.ne.s32.totalorder %s6316_s30, %s5874_s17  ;;  %p5880_p2 = scmp.lt.s32.totalorder %s6316_s30, %s7049_s9 }
  0x4b   : > { %p5881_p5 = scmp.lt.s32.totalorder %s5879_s20, %s5874_s17 }
  0x4c   : > { %p5877_p3 = pnand %p6326_p1, %p5875_p0 }
  0x4d   : > { %p5882_p8 = por %p5881_p5, %p5880_p2 }
  0x4e   : > { %p5878_p4 = pneg %p5877_p3 }
  0x50   : > { %p5883_p9 = pnand %p5882_p8, %p5878_p4 }
  0x52   : > { %5886 = shalt.err (!%p5883_p9)
}
  0x53   : > { %s5887_s14 = scalar_lea.vmem %s6318_s4, 20480  ;;  %s6123_s25 = smov [#allocation14]  }
  0x54   : > { %p5888_p10 = scmp.ne.s32.totalorder %s6318_s4, %s5887_s14  ;;  %s5892_s21 = sshll.u32 %s6123_s25, 4  ;;  %s5893_s21 = int_to_ptr.vmem [resolvable:$false] %s5892_s21 }
  0x55   : > { %s5894_s29 = scalar_lea.vmem %s5893_s21, 40960  ;;  %p5895_p3 = scmp.lt.s32.totalorder %s6318_s4, %s5893_s21 }
  0x56   : > { %p5890_p12 = pnand %p5888_p10, %p6326_p1  ;;  %p5896_p11 = scmp.lt.s32.totalorder %s5894_s29, %s5887_s14 }
  0x58   : > { %p5891_p0 = pneg %p5890_p12  ;;  %p5897_p6 = por %p5896_p11, %p5895_p3 }
  0x5a   : > { %p5898_p7 = pnand %p5897_p6, %p5891_p0 }
  0x5c   : > { %5901 = shalt.err (!%p5898_p7)
}
  0x5d   : > { %s6124_s17 = smov 1280   ;;  %s6125_s20 = smov 80  }
  0x5e   : > { %5323 = dma.hbm_to_vmem [thread:$0]  (!%p6308_p13), %s6316_s30, 20480, %s6318_s4, %s6320_s7, %s6124_s17, %s6124_s17, %s6125_s20  }
  0x5f   : > { %s6126_s2 = smov [#allocation3]   ;;  %p7084_p2 = scmp.ne.s32.totalorder %s7074_s16, 0 }
  0x60   : > { %s340_s13 = sshll.u32 %s6126_s2, 4  ;;  %s341_s13 = int_to_ptr.vmem [resolvable:$true] %s340_s13 }
  0x61   : > { %s5913_s25 = scalar_lea.vmem %s341_s13, 512  ;;  %p5921_p11 = scmp.lt.s32.totalorder %s341_s13, %s341_s13 }
  0x62   : > { %p5914_p4 = scmp.ne.s32.totalorder %s341_s13, %s5913_s25  ;;  %p5922_p6 = scmp.lt.s32.totalorder %s5913_s25, %s5913_s25 }
  0x64   : > { %p5916_p5 = pnand %p5914_p4, %p7084_p2  ;;  %p5923_p7 = por %p5922_p6, %p5921_p11 }
  0x66   : > { %p5917_p8 = pneg %p5916_p5 }
  0x68   : > { %p5924_p9 = pnand %p5923_p7, %p5917_p8 }
  0x6a   : > { %5927 = shalt.err (!%p5924_p9)
}
  0x6b   : > { %s7065_s14 = smov 64   ;;  %s7066_s21 = smov 4  }
  0x6c   : > { %p7085_p10 = scmp.ne.s32.totalorder %s7073_s15, 0  ;;  %s7086_s1 = sld [smem:[#allocation28_spill]] }
  0x6d   : > { %s6129_s29 = smov [#allocation7]   ;;  %s6130_s20 = smov [#allocation10]  }
  0x6e   : > { %s364_s17 = sshll.u32 %s6129_s29, 4  ;;  %s392_s2 = sshll.u32 %s6130_s20, 4  ;;  %s365_s17 = int_to_ptr.vmem [resolvable:$true] %s364_s17  ;;  %s393_s2 = int_to_ptr.vmem [resolvable:$true] %s392_s2 }
  0x6f   : > { %s5939_s25 = scalar_lea.vmem %s365_s17, 1024  ;;  %p5947_p4 = scmp.lt.s32.totalorder %s365_s17, %s365_s17 }
  0x70   : > { %p5940_p12 = scmp.ne.s32.totalorder %s365_s17, %s5939_s25  ;;  %p5948_p5 = scmp.lt.s32.totalorder %s5939_s25, %s5939_s25 }
  0x72   : > { %5301 = dma.hbm_to_vmem [thread:$0]  (!%p7085_p10), %s7086_s1, 512, %s341_s13, [#allocation4], %s7065_s14, %s7065_s14, %s7066_s21  }
  0x73   : > { %p5942_p0 = pnand %p5940_p12, %p7084_p2  ;;  %p5949_p8 = por %p5948_p5, %p5947_p4 }
  0x75   : > { %p5943_p3 = pneg %p5942_p0 }
  0x77   : > { %p5950_p11 = pnand %p5949_p8, %p5943_p3 }
  0x79   : > { %5953 = shalt.err (!%p5950_p11)
}
  0x7a   : > { %5307 = dma.hbm_to_vmem [thread:$0]  (!%p7085_p10), %s7043_s3, 1024, %s365_s17, [#allocation6], %s7065_s14, %s7065_s14, %s7066_s21  }
  0x7b   : > { %s5965_s30 = scalar_lea.vmem %s393_s2, 16  ;;  %s5972_s29 = scalar_lea.vmem %s393_s2, 32 }
  0x7c   : > { %p5966_p6 = scmp.ne.s32.totalorder %s393_s2, %s5965_s30  ;;  %p5973_p12 = scmp.lt.s32.totalorder %s393_s2, %s393_s2 }
  0x7d   : > { %p5974_p0 = scmp.lt.s32.totalorder %s5972_s29, %s5965_s30 }
  0x7e   : > { %p5968_p7 = pnand %p5966_p6, %p7084_p2 }
  0x7f   : > { %p5975_p3 = por %p5974_p0, %p5973_p12 }
  0x80   : > { %p5969_p9 = pneg %p5968_p7 }
  0x82   : > { %p5976_p4 = pnand %p5975_p3, %p5969_p9 }
  0x84   : > { %5979 = shalt.err (!%p5976_p4)
}
  0x85   : > { %5313 = dma.hbm_to_vmem [thread:$0]  (!%p7085_p10), %s7046_s6, 16, %s393_s2, [#allocation9]  }
  0x86   : > { %s6131_s17 = smov [#allocation13]   ;;  %s4453_s4 = sshll.u32 %s6305_s19, 10 }
  0x87   : > { %s415_s13 = sshll.u32 %s6131_s17, 4  ;;  %s416_s13 = int_to_ptr.vmem [resolvable:$true] %s415_s13 }
  0x88   : > { %s5991_s14 = scalar_lea.vmem %s416_s13, 2048  ;;  %p5999_p6 = scmp.lt.s32.totalorder %s416_s13, %s416_s13 }
  0x89   : > { %p5992_p5 = scmp.ne.s32.totalorder %s416_s13, %s5991_s14  ;;  %p6000_p7 = scmp.lt.s32.totalorder %s5991_s14, %s5991_s14 }
  0x8b   : > { %p5994_p8 = pnand %p5992_p5, %p7084_p2  ;;  %p6001_p9 = por %p6000_p7, %p5999_p6 }
  0x8d   : > { %p5995_p11 = pneg %p5994_p8 }
  0x8f   : > { %p6002_p12 = pnand %p6001_p9, %p5995_p11 }
  0x91   : > { %6005 = shalt.err (!%p6002_p12)
}
  0x92   : > { %s7087_s30 = smov 8   ;;  %s7088_s29 = smov 128  }
  0x93   : > { %5319 = dma.hbm_to_vmem [thread:$0]  (!%p7085_p10), %s7048_s8, 2048, %s416_s13, [#allocation12], %s7088_s29, %s7088_s29, %s7087_s30  }
  0x94   : > { %s4789_s25 = sshll.u32 %s6116_s24, 14  ;;  %s454_s16 = scalar_lea.vmem [#allocation16], %s4453_s4 }
  0x95   : > { %s461_s17 = sshll.u32 %s454_s16, 4  ;;  %s6391_s14 = scalar_lea.hbm %s7050_s10, %s4789_s25  ;;  %s462_s17 = int_to_ptr.vmem [resolvable:$true] %s461_s17 }
  0x96   : > { %s6006_s15 = scalar_lea.hbm %s6391_s14, 16384  ;;  %s6011_s13 = scalar_lea.hbm %s7050_s10, 32768 }
  0x97   : > { %p6007_p2 = scmp.ne.s32.totalorder %s6391_s14, %s6006_s15  ;;  %p6012_p10 = scmp.lt.s32.totalorder %s6391_s14, %s7050_s10 }
  0x98   : > { %p6013_p4 = scmp.lt.s32.totalorder %s6011_s13, %s6006_s15 }
  0x99   : > { %p6009_p0 = pnand %p6007_p2, %p6326_p1 }
  0x9a   : > { %p6014_p5 = por %p6013_p4, %p6012_p10 }
  0x9b   : > { %p6010_p3 = pneg %p6009_p0 }
  0x9d   : > { %p6015_p8 = pnand %p6014_p5, %p6010_p3 }
  0x9f   : > { %6018 = shalt.err (!%p6015_p8)
}
  0xa0   : > { %s6019_s1 = scalar_lea.vmem %s462_s17, 16384  ;;  %s6132_s21 = smov [#allocation16]  }
  0xa1   : > { %p6020_p11 = scmp.ne.s32.totalorder %s462_s17, %s6019_s1  ;;  %s6024_s29 = sshll.u32 %s6132_s21, 4  ;;  %s6025_s29 = int_to_ptr.vmem [resolvable:$false] %s6024_s29 }
  0xa2   : > { %s6026_s25 = scalar_lea.vmem %s6025_s29, 32768  ;;  %p6027_p9 = scmp.lt.s32.totalorder %s462_s17, %s6025_s29 }
  0xa3   : > { %p6022_p6 = pnand %p6020_p11, %p6326_p1  ;;  %p6028_p12 = scmp.lt.s32.totalorder %s6026_s25, %s6019_s1 }
  0xa5   : > { %p6023_p7 = pneg %p6022_p6  ;;  %p6029_p2 = por %p6028_p12, %p6027_p9 }
  0xa7   : > { %p6030_p0 = pnand %p6029_p2, %p6023_p7 }
  0xa9   : > { %6033 = shalt.err (!%p6030_p0)
}
  0xaa   : > { %s7089_s16 = smov 4   ;;  %s7090_s15 = smov 64  }
  0xab   : > { %5326 = dma.hbm_to_vmem [thread:$0]  (!%p6308_p13), %s6391_s14, 16384, %s462_s17, %s6320_s7, %s7090_s15, %s7090_s15, %s7089_s16  }
  0xac   : > { %s5260_s2 = smul.u32 25, %s6305_s19  ;;  %s472_s29 = scalar_lea.sflag [#allocation18], %s6305_s19 }
  0xad   : > { %s5261_s20 = smul.u32 400, %s6116_s24  ;;  %s6039_s24 = scalar_lea.hbm %s7051_s11, 800 }
  0xae   : > { %s475_s1 = scalar_lea.vmem [#allocation17], %s5260_s2 }
  0xaf   : > { %s6418_s30 = scalar_lea.hbm %s7051_s11, %s5261_s20  ;;  %s483_s21 = sshll.u32 %s475_s1, 4  ;;  %s484_s21 = int_to_ptr.vmem [resolvable:$true] %s483_s21 }
  0xb0   : > { %s6034_s25 = scalar_lea.hbm %s6418_s30, 400  ;;  %p6040_p5 = scmp.lt.s32.totalorder %s6418_s30, %s7051_s11 }
  0xb1   : > { %p6035_p3 = scmp.ne.s32.totalorder %s6418_s30, %s6034_s25  ;;  %p6041_p8 = scmp.lt.s32.totalorder %s6039_s24, %s6034_s25 }
  0xb3   : > { %p6037_p10 = pnand %p6035_p3, %p6326_p1  ;;  %p6042_p11 = por %p6041_p8, %p6040_p5 }
  0xb5   : > { %p6038_p4 = pneg %p6037_p10 }
  0xb7   : > { %p6043_p6 = pnand %p6042_p11, %p6038_p4 }
  0xb9   : > { %6046 = shalt.err (!%p6043_p6)
}
  0xba   : > { %s6047_s15 = scalar_lea.vmem %s484_s21, 400  ;;  %s6133_s19 = smov [#allocation17]  }
  0xbb   : > { %p6048_p7 = scmp.ne.s32.totalorder %s484_s21, %s6047_s15  ;;  %s6052_s2 = sshll.u32 %s6133_s19, 4  ;;  %s6053_s2 = int_to_ptr.vmem [resolvable:$false] %s6052_s2 }
  0xbc   : > { %s6054_s20 = scalar_lea.vmem %s6053_s2, 800  ;;  %p6055_p2 = scmp.lt.s32.totalorder %s484_s21, %s6053_s2 }
  0xbd   : > { %p6050_p9 = pnand %p6048_p7, %p6326_p1  ;;  %p6056_p0 = scmp.lt.s32.totalorder %s6054_s20, %s6047_s15 }
  0xbf   : > { %p6051_p12 = pneg %p6050_p9  ;;  %p6057_p3 = por %p6056_p0, %p6055_p2 }
  0xc1   : > { %p6058_p10 = pnand %p6057_p3, %p6051_p12 }
  0xc3   : > { %6061 = shalt.err (!%p6058_p10)
}
  0xc4   : > { %5329 = dma.hbm_to_vmem [thread:$0]  (!%p6308_p13), %s6418_s30, 400, %s484_s21, %s472_s29  }
  0xc5   : > { %p7091_p4 = scmp.ne.s32.totalorder %s7072_s28, 0 }
  0xc6   : > { %p7092_p5 = scmp.eq.s32.totalorder (!%p7091_p4), %s6227_s27, 0 }
  0xc7   : > { %492 = sbr.rel (%p7091_p4) target bundleno = 3112 (0xc28), region = 68 }
  0xcc   : > { %6079 = dma.done.wait (%p7092_p5), [#allocation4], 512   ;;  %p7093_p1 = pmov %p7092_p5 }
  0xce   : > { %6081 = vsyncadd (%p7093_p1), [#allocation4], 4294966784  ;;  %p7094_p8 = pmov %p7093_p1 }
  0xcf   : > { %p7095_p11 = pmov %p7093_p1 }
  0xd0   : > { %6083 = dma.done.wait (%p7094_p8), [#allocation6], 1040  }
  0xd1   : > { %6085 = vsyncadd (%p7095_p11), [#allocation6], 4294966256  ;;  %p7096_p6 = pmov %p7093_p1 }
  0xd2   : > { %p7097_p13 = pmov %p7093_p1 }
  0xd3   : > { %6087 = dma.done.wait (%p7096_p6), [#allocation9], 32  }
  0xd4   : > { %6089 = vsyncadd (%p7097_p13), [#allocation9], 4294967264  ;;  %p7098_p7 = pmov %p7093_p1 }
  0xd5   : > { %p7099_p9 = pmov %p7093_p1 }
  0xd6   : > { %6091 = dma.done.wait (%p7098_p7), [#allocation12], 2304  }
  0xd7   : > { %6093 = vsyncadd (%p7099_p9), [#allocation12], 4294964992  ;;  %s522_s23 = sand.u32 1, %s6227_s27   ;;  %s524_s28 = sand.u32 1, %s6108_s22  }
  0xd8   : > { %s5262_s18 = smul.u32 1280, %s524_s28  ;;  %s523_s13 = scalar_lea.sflag [#allocation15], %s522_s23 }
  0xd9   : > { %p7100_p12 = scmp.ne.s32.totalorder %s7081_s26, 0 }
  0xda   : > { %s6457_s4 = scalar_lea.vmem [#allocation14], %s5262_s18 }
  0xdb   : > { %6095 = dma.done.wait (%p7100_p12), %s523_s13, 36864  }
  0xdc   : > { %6097 = vsyncadd (%p7100_p12), %s523_s13, 4294930432  ;;  %s4465_s30 = sshll.u32 %s524_s28, 10  ;;  %s5263_s1 = smul.u32 25, %s524_s28 }
  0xdd   : > { %s6463_s21 = scalar_lea.vmem [#allocation16], %s4465_s30  ;;  %s541_s29 = scalar_lea.sflag [#allocation18], %s524_s28 }
  0xde   : > { %s6465_s25 = scalar_lea.vmem [#allocation17], %s5263_s1 }
  0xdf   : > { %6099 = dma.done.wait (%p7100_p12), %s541_s29, 400  }
  0xe0   : > { %6101 = vsyncadd (%p7100_p12), %s541_s29, 4294966896  ;;  %p7101_p2 = scmp.ne.s32.totalorder %s6227_s27, 0 }
  0xe2   : > { %594 = sbr.rel (%p7101_p2) target bundleno = 653 (0x28d), region = 112 }
  0xe7   : > { %v5397_v0 = vld [vmem:[#allocation3 + $0x18] sm:$0xff]   ;;  %v6134_v1 = vmov 0.0   ;;  %v5398_v2 = vld [vmem:[#allocation3 + $0x10] sm:$0xff]   ;;  %vm6135_vm0 = vmmov 0   ;;  %v5399_v4 = vld [vmem:[#allocation3 + $0x8] sm:$0xff]   ;;  %vm641_vm1 = vcmask 523264  }
  0xe8   : > { %5061 = vmatprep.subr.bf16.mxu0 %v6134_v1  ;;  %5073 = vmatprep.subr.bf16.mxu1 %v6134_v1  ;;  %v5402_v3 = vld [vmem:[#allocation7 + $0x38] sm:$0xff]   ;;  %v5403_v5 = vld [vmem:[#allocation7 + $0x30] sm:$0xff]   ;;  %v5404_v7 = vld [vmem:[#allocation7 + $0x28] sm:$0xff]  }
  0xe9   : > { %5062 = vmatpush3.bf16.msra.mxu0 %v5397_v0  ;;  %5069 = vmatprep.mubr.msk.bf16.mxu0 %vm6135_vm0, %v6134_v1  ;;  %v5400_v6 = vld [vmem:[#allocation3] sm:$0xff]   ;;  %v5401_v8 = vld [vmem:[%s7040_s0] sm:$0xff]  }
  0xea   : > { %5063 = vmatprep.subr.bf16.mxu0 %v6134_v1  ;;  %5089 = vmatprep.mubr.msk.bf16.mxu1 %vm6135_vm0, %v6134_v1  ;;  %v5405_v9 = vld [vmem:[#allocation7 + $0x20] sm:$0xff]   ;;  %v5406_v10 = vld [vmem:[#allocation7 + $0x18] sm:$0xff]   ;;  %v5407_v11 = vld [vmem:[#allocation7 + $0x10] sm:$0xff]  }
  0xeb   : > { %5074 = vmatpush3.bf16.msra.mxu1 %v5402_v3  ;;  %v5408_v12 = vld [vmem:[#allocation7 + $0x8] sm:$0xff]   ;;  %v5409_v13 = vld [vmem:[#allocation7] sm:$0xff]   ;;  %v4467_v14 = vld [vmem:[#allocation5] ss:$0 sm:$0xff] }
  0xec   : > { %5075 = vmatprep.subr.bf16.mxu1 %v6134_v1  ;;  %v4474_v24 = vld [vmem:[#allocation8] ss:$0 sm:$0xff] }
  0xed   : > { %5064 = vmatpush3.bf16.msra.mxu0 %v5398_v2 }
  0xee   : > { %5065 = vmatprep.subr.bf16.mxu0 %v6134_v1 }
  0xef   : > { %5076 = vmatpush3.bf16.msra.mxu1 %v5403_v5 }
  0xf0   : > { %5077 = vmatprep.subr.bf16.mxu1 %v6134_v1 }
  0xf1   : > { %5066 = vmatpush3.bf16.msra.mxu0 %v5399_v4 }
  0xf2   : > { %5067 = vmatprep.subr.bf16.mxu0 %v6134_v1 }
  0xf3   : > { %5078 = vmatpush3.bf16.msra.mxu1 %v5404_v7 }
  0xf4   : > { %5079 = vmatprep.subr.bf16.mxu1 %v6134_v1 }
  0xf5   : > { %5068 = vmatpush3.bf16.msra.mxu0 %v5400_v6 }
  0xf7   : > { %5080 = vmatpush3.bf16.msra.mxu1 %v5405_v9 }
  0xf8   : > { %5070 = vmatmul.mubr.msk.bf16.vlgmr.msra.gmra.mxu0 %vm641_vm1, %v5401_v8  ;;  %5081 = vmatprep.subr.bf16.mxu1 %v6134_v1 }
  0xfb   : > { %5082 = vmatpush3.bf16.msra.mxu1 %v5406_v10 }
  0xfc   : > { %5083 = vmatprep.subr.bf16.mxu1 %v6134_v1 }
  0xff   : > { %5084 = vmatpush3.bf16.msra.mxu1 %v5407_v11 }
 0x100   : > { %5085 = vmatprep.subr.bf16.mxu1 %v6134_v1 }
 0x103   : > { %5086 = vmatpush3.bf16.msra.mxu1 %v5408_v12 }
 0x104   : > { %5087 = vmatprep.subr.bf16.mxu1 %v6134_v1 }
 0x107   : > { %5088 = vmatpush3.bf16.msra.mxu1 %v5409_v13 }
 0x1b8   : > { %v679_v15 = vpop.f32.mrf.mxu0 }
 0x1b9   : > { %v680_v17 = vadd.f32 %v4467_v14, %v679_v15 }
 0x1ba   : > { %v5071_v16 = vpop.f32.mrf.mxu0 }
 0x1bb   : > { %v686_v21 = vmax.f32 %v680_v17, 0.0 }
 0x1bc   : > { %v682_v18 = vpop.f32.mrf.mxu0 }
 0x1bd   : > { %v683_v19 = vadd.f32 %v4467_v14, %v682_v18 }
 0x1be   : > { %v5072_v20 = vpop.f32.mrf.mxu0 }
 0x1bf   : > { %v687_v22 = vmax.f32 %v683_v19, 0.0 }
 0x1c1   : > { %v688_v23 = vpack.c.bf16 %v687_v22, %v686_v21 }
 0x1c3   : > { %5090 = vmatmul.mubr.bf16.vlgmr.msra.gmra.mxu1 %v688_v23 }
 0x283   : > { %v794_v25 = vpop.f32.mrf.mxu1 }
 0x284   : > { %v795_v26 = vadd.f32 %v4474_v24, %v794_v25 }
 0x285   : > { %v5091_v27 = vpop.f32.mrf.mxu1 }
 0x286   : > { %v801_v28 = vmax.f32 %v795_v26, 0.0 }
 0x287   : > { %v797_v29 = vpop.f32.mrf.mxu1 }
 0x288   : > { %803 = vst [vmem:[#allocation2] sm:$0xff] %v801_v28  ;;  %v798_v30 = vadd.f32 %v4474_v24, %v797_v29 }
 0x289   : > { %v5092_v31 = vpop.f32.mrf.mxu1 }
 0x28a   : > { %v802_v32 = vmax.f32 %v798_v30, 0.0 }
 0x28c   : > { %804 = vst [vmem:[#allocation2 + $0x8] sm:$0xff] %v802_v32 }
 0x28d PF: > { %v5410_v33 = vld [vmem:[%s6457_s4 + $0x464] ss:$80 sps:$4 sm:$0xff]   ;;  %v5412_v34 = vld [vmem:[%s6457_s4 + $0x460] ss:$80 sps:$4 sm:$0xff]   ;;  %v6136_v35 = vmov 0   ;;  %v6137_v54 = vmov 0.0   ;;  %v842_v62 = vlaneseq }
 0x28e   : > { %1017 = vmatprep.mubr.bf16.mxu0 %v6136_v35  ;;  %985 = vmatprep.subr.bf16.mxu0 %v5410_v33  ;;  %v5413_v36 = vld [vmem:[%s6457_s4 + $0x3c4] ss:$80 sps:$4 sm:$0xff]   ;;  %v5415_v37 = vld [vmem:[%s6457_s4 + $0x3c0] ss:$80 sps:$4 sm:$0xff]   ;;  %v5434_v53 = vld [vmem:[%s6457_s4 + $0x468] ss:$80 sps:$4 sm:$0xff]  }
 0x28f   : > { %986 = vmatpush1.bf16.msra.mxu0 %v5412_v34  ;;  %v5416_v38 = vld [vmem:[%s6457_s4 + $0x324] ss:$80 sps:$4 sm:$0xff]   ;;  %v5418_v39 = vld [vmem:[%s6457_s4 + $0x320] ss:$80 sps:$4 sm:$0xff]   ;;  %5093 = vmatprep.subr.bf16.mxu1 %v6137_v54  ;;  %vm6138_vm2 = vmmov 0   ;;  %v6511_v63 = vshrl.u32 %v842_v62, 7 }
 0x290   : > { %987 = vmatprep.subr.bf16.mxu0 %v5413_v36  ;;  %v5419_v40 = vld [vmem:[%s6457_s4 + $0x284] ss:$80 sps:$4 sm:$0xff]   ;;  %v5421_v41 = vld [vmem:[%s6457_s4 + $0x280] ss:$80 sps:$4 sm:$0xff]   ;;  %5109 = vmatprep.mubr.msk.bf16.mxu1 %vm6138_vm2, %v6137_v54  ;;  %v5435_v55 = vld [vmem:[%s6457_s4 + $0x3c8] ss:$80 sps:$4 sm:$0xff]  }
 0x291   : > { %v5422_v42 = vld [vmem:[%s6457_s4 + $0x1e4] ss:$80 sps:$4 sm:$0xff]   ;;  %v5424_v43 = vld [vmem:[%s6457_s4 + $0x1e0] ss:$80 sps:$4 sm:$0xff]   ;;  %5094 = vmatpush3.bf16.msra.mxu1 %v5434_v53  ;;  %v5436_v56 = vld [vmem:[%s6457_s4 + $0x328] ss:$80 sps:$4 sm:$0xff]  }
 0x292   : > { %v5425_v44 = vld [vmem:[%s6457_s4 + $0x144] ss:$80 sps:$4 sm:$0xff]   ;;  %v5427_v45 = vld [vmem:[%s6457_s4 + $0x140] ss:$80 sps:$4 sm:$0xff]   ;;  %5095 = vmatprep.subr.bf16.mxu1 %v6137_v54  ;;  %v5437_v57 = vld [vmem:[%s6457_s4 + $0x288] ss:$80 sps:$4 sm:$0xff]  }
 0x293   : > { %988 = vmatpush1.bf16.msra.mxu0 %v5415_v37  ;;  %v5428_v46 = vld [vmem:[%s6457_s4 + $0xa4] ss:$80 sps:$4 sm:$0xff]   ;;  %v5430_v47 = vld [vmem:[%s6457_s4 + $0xa0] ss:$80 sps:$4 sm:$0xff]   ;;  %v5438_v58 = vld [vmem:[%s6457_s4 + $0x1e8] ss:$80 sps:$4 sm:$0xff]  }
 0x294   : > { %989 = vmatprep.subr.bf16.mxu0 %v5416_v38  ;;  %v5431_v48 = vld [vmem:[%s6457_s4 + $0x4] ss:$80 sps:$4 sm:$0xff]   ;;  %v5433_v49 = vld [vmem:[%s6457_s4] ss:$80 sps:$4 sm:$0xff]   ;;  %v5439_v59 = vld [vmem:[%s6457_s4 + $0x148] ss:$80 sps:$4 sm:$0xff]  }
 0x295   : > { %v805_v50 = vld [vmem:[#allocation2] sm:$0xff]  ;;  %v806_v51 = vld [vmem:[#allocation2 + $0x8] sm:$0xff]  ;;  %5096 = vmatpush3.bf16.msra.mxu1 %v5435_v55  ;;  %v6514_v0 = vsub.s32 0, %v6511_v63  ;;  %v6522_v3 = vsub.s32 1, %v6511_v63  ;;  %v6530_v14 = vld [vmem:[#allocation13 + $0x70] sm:$0xff]  ;;  %p4777_p0 = scmp.ne.s32.totalorder %s6227_s27, 1 }
 0x296   : > { %v807_v52 = vpack.c.bf16 %v806_v51, %v805_v50  ;;  %5097 = vmatprep.subr.bf16.mxu1 %v6137_v54  ;;  %v5440_v60 = vld [vmem:[%s6457_s4 + $0xa8] ss:$80 sps:$4 sm:$0xff]   ;;  %v6537_v19 = vld [vmem:[#allocation13 + $0x60] sm:$0xff]  ;;  %v6543_v23 = vld [vmem:[#allocation13 + $0x50] sm:$0xff] }
 0x297   : > { %990 = vmatpush1.bf16.msra.mxu0 %v5418_v39  ;;  %v5441_v61 = vld [vmem:[%s6457_s4 + $0x8] ss:$80 sps:$4 sm:$0xff]   ;;  %v6549_v27 = vld [vmem:[#allocation13 + $0x40] sm:$0xff]  ;;  %v6555_v31 = vld [vmem:[#allocation13 + $0x30] sm:$0xff] }
 0x298   : > { %991 = vmatprep.subr.bf16.mxu0 %v5419_v40  ;;  %v6517_v1 = vld [vmem:[%s6465_s25] sm:$0x7]  ;;  %v6534_v17 = vld [vmem:[#allocation13 + $0x68] sm:$0xff]  ;;  %v6567_v40 = vld [vmem:[#allocation13 + $0x10] sm:$0xff] }
 0x299   : > { %5098 = vmatpush3.bf16.msra.mxu1 %v5436_v56  ;;  %v845_v2 = vrot.slane %v6517_v1, %v6514_v0  ;;  %v849_v7 = vrot.slane %v6517_v1, %v6522_v3  ;;  %v6528_v11 = vld [vmem:[#allocation13 + $0x78] sm:$0xff]  ;;  %v6546_v25 = vld [vmem:[#allocation13 + $0x48] sm:$0xff]  ;;  %v6561_v36 = vld [vmem:[#allocation13 + $0x20] sm:$0xff] }
 0x29a   : > { %5099 = vmatprep.subr.bf16.mxu1 %v6137_v54  ;;  %v6540_v21 = vld [vmem:[#allocation13 + $0x58] sm:$0xff]  ;;  %v6558_v33 = vld [vmem:[#allocation13 + $0x28] sm:$0xff] }
 0x29b   : > { %992 = vmatpush1.bf16.msra.mxu0 %v5421_v41  ;;  %v6552_v29 = vld [vmem:[#allocation13 + $0x38] sm:$0xff] }
 0x29c   : > { %993 = vmatprep.subr.bf16.mxu0 %v5422_v42  ;;  %v6564_v38 = vld [vmem:[#allocation13 + $0x18] sm:$0xff]  ;;  %v6570_v42 = vld [vmem:[#allocation13 + $0x8] sm:$0xff] }
 0x29d   : > { %5100 = vmatpush3.bf16.msra.mxu1 %v5437_v57 }
 0x29e   : > { %5101 = vmatprep.subr.bf16.mxu1 %v6137_v54 }
 0x29f   : > { %994 = vmatpush1.bf16.msra.mxu0 %v5424_v43 }
 0x2a0   : > { %995 = vmatprep.subr.bf16.mxu0 %v5425_v44  ;;  %v6573_v44 = vld [vmem:[#allocation13] sm:$0xff] }
 0x2a1   : > { %5102 = vmatpush3.bf16.msra.mxu1 %v5438_v58 }
 0x2a2   : > { %5103 = vmatprep.subr.bf16.mxu1 %v6137_v54 }
 0x2a3   : > { %996 = vmatpush1.bf16.msra.mxu0 %v5427_v45 }
 0x2a4   : > { %997 = vmatprep.subr.bf16.mxu0 %v5428_v46  ;;  %v6581_v46 = vsub.s32 2, %v6511_v63 }
 0x2a5   : > { %5104 = vmatpush3.bf16.msra.mxu1 %v5439_v59 }
 0x2a6   : > { %5105 = vmatprep.subr.bf16.mxu1 %v6137_v54 }
 0x2a7   : > { %998 = vmatpush1.bf16.msra.mxu0 %v5430_v47 }
 0x2a8   : > { %999 = vmatprep.subr.bf16.mxu0 %v5431_v48  ;;  %v853_v48 = vrot.slane %v6517_v1, %v6581_v46 }
 0x2a9   : > { %5106 = vmatpush3.bf16.msra.mxu1 %v5440_v60 }
 0x2aa   : > { %5107 = vmatprep.subr.bf16.mxu1 %v6137_v54 }
 0x2ab   : > { %1000 = vmatpush1.bf16.msra.mxu0 %v5433_v49 }
 0x2ad   : > { %5108 = vmatpush3.bf16.msra.mxu1 %v5441_v61 }
 0x2ae   : > { %1018 = vmatmul.mubr.bf16.vlgmr.msra.gmra.mxu0 %v807_v52 }
 0x2b0   : > { %5110 = vmatmul.mubr.bf16.vlgmr.msra.gmra.mxu1 %v807_v52 }
 0x36e   : > { %v1019_v4 = vpop.f32.mrf.mxu0 }
 0x36f   : > { %v1020_v5 = vadd.f32 %v1019_v4, %v845_v2 }
 0x370   : > { %v1021_v6 = vpop.f32.mrf.mxu0  ;;  %v1062_v47 = vpop.f32.mrf.mxu1 }
 0x371   : > { %5145 = vmatprep.mubr.f32.mxu0 %v1020_v5  ;;  %v1022_v12 = vadd.f32 %v1021_v6, %v849_v7  ;;  %v1063_v50 = vadd.f32 %v1062_v47, %v853_v48 }
 0x372   : > { %v1023_v8 = vpop.f32.mrf.mxu0  ;;  %v5111_v49 = vpop.f32.mrf.mxu1 }
 0x373   : > { %v6526_v9 = vadd.f32 %v1023_v8, %v845_v2  ;;  %v1099_v16 = vmul.f32 %v6530_v14, %v1022_v12  ;;  %v1097_v20 = vmul.f32 %v6537_v19, %v1022_v12  ;;  %v1095_v24 = vmul.f32 %v6543_v23, %v1022_v12 }
 0x374   : > { %v1025_v10 = vpop.f32.mrf.mxu0  ;;  %v1093_v28 = vmul.f32 %v6549_v27, %v1022_v12  ;;  %v1091_v32 = vmul.f32 %v6555_v31, %v1022_v12  ;;  %v1089_v37 = vmul.f32 %v6561_v36, %v1022_v12  ;;  %v1087_v41 = vmul.f32 %v6567_v40, %v1022_v12  ;;  %v1065_v51 = vpop.f32.mrf.mxu1 }
 0x375   : > { %v1026_v13 = vadd.f32 %v1025_v10, %v849_v7  ;;  %v1085_v45 = vmul.f32 %v6573_v44, %v1022_v12  ;;  %v1066_v52 = vadd.f32 %v1065_v51, %v853_v48  ;;  %v1115_v56 = vmul.f32 %v6530_v14, %v1063_v50  ;;  %v1117_v12 = vld [vmem:[#allocation11] sm:$0xff]  ;;  %v5787_v51 = vld [vmem:[#allocation2 + $0x8] sm:$0xff] }
 0x376   : > { %v5112_v53 = vpop.f32.mrf.mxu1  ;;  %v1113_v58 = vmul.f32 %v6537_v19, %v1063_v50  ;;  %v1111_v60 = vmul.f32 %v6543_v23, %v1063_v50  ;;  %v1109_v62 = vmul.f32 %v6549_v27, %v1063_v50  ;;  %v1107_v2 = vmul.f32 %v6555_v31, %v1063_v50 }
 0x377   : > { %v1100_v15 = vmul.f32 %v6528_v11, %v1026_v13  ;;  %v1098_v18 = vmul.f32 %v6534_v17, %v1026_v13  ;;  %v1096_v22 = vmul.f32 %v6540_v21, %v1026_v13  ;;  %v1094_v26 = vmul.f32 %v6546_v25, %v1026_v13  ;;  %v5450_v53 = vld [vmem:[%s6457_s4 + $0x470] ss:$80 sps:$4 sm:$0xff]  }
 0x378   : > { %v1092_v30 = vmul.f32 %v6552_v29, %v1026_v13  ;;  %v1090_v34 = vmul.f32 %v6558_v33, %v1026_v13  ;;  %v1088_v39 = vmul.f32 %v6564_v38, %v1026_v13  ;;  %v1086_v43 = vmul.f32 %v6570_v42, %v1026_v13 }
 0x379   : > { %5113 = vmatprep.subr.mxu0 %v1100_v15  ;;  %v1116_v55 = vmul.f32 %v6528_v11, %v1066_v52  ;;  %v1114_v57 = vmul.f32 %v6534_v17, %v1066_v52  ;;  %v1112_v59 = vmul.f32 %v6540_v21, %v1066_v52  ;;  %v1110_v61 = vmul.f32 %v6546_v25, %v1066_v52 }
 0x37a   : > { %5114 = vmatpush3.xpose.msra.mxu0 %v1100_v15  ;;  %v1108_v1 = vmul.f32 %v6552_v29, %v1066_v52  ;;  %v1106_v4 = vmul.f32 %v6558_v33, %v1066_v52  ;;  %v1105_v5 = vmul.f32 %v6561_v36, %v1063_v50  ;;  %v1104_v6 = vmul.f32 %v6564_v38, %v1066_v52 }
 0x37b   : > { %5115 = vmatprep.subr.mxu0 %v1099_v16  ;;  %5148 = vmatprep.subr.mxu1 %v1116_v55  ;;  %v1103_v7 = vmul.f32 %v6567_v40, %v1063_v50  ;;  %v1102_v8 = vmul.f32 %v6570_v42, %v1066_v52 }
 0x37c   : > { %5149 = vmatpush3.msra.mxu1 %v1116_v55  ;;  %v5452_v55 = vld [vmem:[%s6457_s4 + $0x474] ss:$80 sps:$4 sm:$0xff]  }
 0x37d   : > { %5150 = vmatprep.subr.mxu1 %v1115_v56 }
 0x37e   : > { %5116 = vmatpush3.xpose.msra.mxu0 %v1099_v16  ;;  %5151 = vmatpush3.msra.mxu1 %v1115_v56  ;;  %v1118_v16 = vld [vmem:[#allocation11 + $0x8] sm:$0xff] }
 0x37f   : > { %5117 = vmatprep.subr.mxu0 %v1098_v18  ;;  %5152 = vmatprep.subr.mxu1 %v1114_v57  ;;  %v5453_v56 = vld [vmem:[%s6457_s4 + $0x478] ss:$80 sps:$4 sm:$0xff]  }
 0x380   : > { %5153 = vmatpush3.msra.mxu1 %v1114_v57  ;;  %v5455_v57 = vld [vmem:[%s6457_s4 + $0x47c] ss:$80 sps:$4 sm:$0xff]  }
 0x381   : > { %5154 = vmatprep.subr.mxu1 %v1113_v58 }
 0x382   : > { %5118 = vmatpush3.xpose.msra.mxu0 %v1098_v18  ;;  %5155 = vmatpush3.msra.mxu1 %v1113_v58 }
 0x383   : > { %5119 = vmatprep.subr.mxu0 %v1097_v20  ;;  %5156 = vmatprep.subr.mxu1 %v1112_v59 }
 0x384   : > { %5157 = vmatpush3.msra.mxu1 %v1112_v59 }
 0x385   : > { %5158 = vmatprep.subr.mxu1 %v1111_v60 }
 0x386   : > { %5120 = vmatpush3.xpose.msra.mxu0 %v1097_v20  ;;  %5159 = vmatpush3.msra.mxu1 %v1111_v60 }
 0x387   : > { %5121 = vmatprep.subr.mxu0 %v1096_v22  ;;  %5160 = vmatprep.subr.mxu1 %v1110_v61 }
 0x388   : > { %5161 = vmatpush3.msra.mxu1 %v1110_v61 }
 0x389   : > { %5162 = vmatprep.subr.mxu1 %v1109_v62 }
 0x38a   : > { %5122 = vmatpush3.xpose.msra.mxu0 %v1096_v22  ;;  %5163 = vmatpush3.msra.mxu1 %v1109_v62 }
 0x38b   : > { %5123 = vmatprep.subr.mxu0 %v1095_v24  ;;  %5164 = vmatprep.subr.mxu1 %v1108_v1 }
 0x38c   : > { %5165 = vmatpush3.msra.mxu1 %v1108_v1 }
 0x38d   : > { %5166 = vmatprep.subr.mxu1 %v1107_v2 }
 0x38e   : > { %5124 = vmatpush3.xpose.msra.mxu0 %v1095_v24  ;;  %5167 = vmatpush3.msra.mxu1 %v1107_v2 }
 0x38f   : > { %5125 = vmatprep.subr.mxu0 %v1094_v26  ;;  %5168 = vmatprep.subr.mxu1 %v1106_v4 }
 0x390   : > { %5169 = vmatpush3.msra.mxu1 %v1106_v4 }
 0x391   : > { %5170 = vmatprep.subr.mxu1 %v1105_v5 }
 0x392   : > { %5126 = vmatpush3.xpose.msra.mxu0 %v1094_v26  ;;  %5171 = vmatpush3.msra.mxu1 %v1105_v5  ;;  %v5458_v5 = vld [vmem:[%s6457_s4 + $0x3d4] ss:$80 sps:$4 sm:$0xff]  }
 0x393   : > { %5127 = vmatprep.subr.mxu0 %v1093_v28  ;;  %5172 = vmatprep.subr.mxu1 %v1104_v6 }
 0x394   : > { %5173 = vmatpush3.msra.mxu1 %v1104_v6  ;;  %v5461_v6 = vld [vmem:[%s6457_s4 + $0x3dc] ss:$80 sps:$4 sm:$0xff]  }
 0x395   : > { %5174 = vmatprep.subr.mxu1 %v1103_v7 }
 0x396   : > { %5128 = vmatpush3.xpose.msra.mxu0 %v1093_v28  ;;  %5175 = vmatpush3.msra.mxu1 %v1103_v7  ;;  %v5456_v7 = vld [vmem:[%s6457_s4 + $0x3d0] ss:$80 sps:$4 sm:$0xff]  }
 0x397   : > { %5129 = vmatprep.subr.mxu0 %v1092_v30  ;;  %5176 = vmatprep.subr.mxu1 %v1102_v8 }
 0x398   : > { %5177 = vmatpush3.msra.mxu1 %v1102_v8  ;;  %v5459_v8 = vld [vmem:[%s6457_s4 + $0x3d8] ss:$80 sps:$4 sm:$0xff]  }
 0x39a   : > { %5130 = vmatpush3.xpose.msra.mxu0 %v1092_v30 }
 0x39b   : > { %5131 = vmatprep.subr.mxu0 %v1091_v32 }
 0x39e   : > { %5132 = vmatpush3.xpose.msra.mxu0 %v1091_v32 }
 0x39f   : > { %5133 = vmatprep.subr.mxu0 %v1090_v34 }
 0x3a2   : > { %5134 = vmatpush3.xpose.msra.mxu0 %v1090_v34 }
 0x3a3   : > { %5135 = vmatprep.subr.mxu0 %v1089_v37 }
 0x3a6   : > { %5136 = vmatpush3.xpose.msra.mxu0 %v1089_v37 }
 0x3a7   : > { %5137 = vmatprep.subr.mxu0 %v1088_v39 }
 0x3aa   : > { %5138 = vmatpush3.xpose.msra.mxu0 %v1088_v39 }
 0x3ab   : > { %5139 = vmatprep.subr.mxu0 %v1087_v41 }
 0x3ae   : > { %5140 = vmatpush3.xpose.msra.mxu0 %v1087_v41 }
 0x3af   : > { %5141 = vmatprep.subr.mxu0 %v1086_v43 }
 0x3b2   : > { %5142 = vmatpush3.xpose.msra.mxu0 %v1086_v43 }
 0x3b3   : > { %5143 = vmatprep.subr.mxu0 %v1085_v45 }
 0x3b6   : > { %5144 = vmatpush3.xpose.msra.mxu0 %v1085_v45  ;;  %v5786_v45 = vld [vmem:[#allocation2] sm:$0xff] }
 0x3b7   : > { %5218 = vmatprep.subr.bf16.mxu0 %v6137_v54 }
 0x3b9   : > { %5146 = vmatmul.mubr.f32.vlgmr.msra.gmra.mxu0 %v6526_v9  ;;  %v1101_v9 = vmul.f32 %v6573_v44, %v1063_v50 }
 0x3ba   : > { %5234 = vmatprep.mubr.msk.bf16.mxu0 %vm6138_vm2, %v6137_v54 }
 0x3bb   : > { %5178 = vmatprep.subr.mxu1 %v1101_v9 }
 0x3bc   : > { %5179 = vmatpush3.msra.mxu1 %v1101_v9  ;;  %v5464_v9 = vld [vmem:[%s6457_s4 + $0x334] ss:$80 sps:$4 sm:$0xff]  }
 0x3bd   : > { %5183 = vmatprep.subr.mxu1 %v6528_v11 }
 0x479   : > { %v5147_v10 = vpop.f32.mrf.mxu0 }
 0x47a   : > { %v1191_v18 = vadd.f32 %v5147_v10, %v1118_v16  ;;  %v5467_v10 = vld [vmem:[%s6457_s4 + $0x33c] ss:$80 sps:$4 sm:$0xff]  }
 0x47b   : > { %v1185_v13 = vpop.f32.mrf.mxu0  ;;  %v5473_v16 = vld [vmem:[%s6457_s4 + $0x29c] ss:$80 sps:$4 sm:$0xff]  }
 0x47c   : > { %v1186_v15 = vadd.f32 %v1185_v13, %v1117_v12  ;;  %v5462_v12 = vld [vmem:[%s6457_s4 + $0x330] ss:$80 sps:$4 sm:$0xff]   ;;  %v5465_v13 = vld [vmem:[%s6457_s4 + $0x338] ss:$80 sps:$4 sm:$0xff]  }
 0x47e   : > { %1194 = vmax.xlane.f32.xlu0 %v1186_v15 }
 0x482   : > { %1196 = vmax.xlane.f32.xlu0 %v1191_v18 }
 0x507   : > { %v1195_v20 = vpop.xlane.xlu0 %1194 }
 0x508   : > { %v1198_v22 = vsub.f32 %v1186_v15, %v1195_v20  ;;  %v5470_v15 = vld [vmem:[%s6457_s4 + $0x294] ss:$80 sps:$4 sm:$0xff]   ;;  %v5471_v20 = vld [vmem:[%s6457_s4 + $0x298] ss:$80 sps:$4 sm:$0xff]  }
 0x50a   : > { %v1200_v24 = vmul.f32 1.442695, %v1198_v22  ;;  %v5476_v22 = vld [vmem:[%s6457_s4 + $0x1f4] ss:$80 sps:$4 sm:$0xff]  }
 0x50b   : > { %v1197_v26 = vpop.xlane.xlu0 %1196 }
 0x50c   : > { %5770 = vpow2.f32 %v1200_v24  ;;  %v1199_v28 = vsub.f32 %v1191_v18, %v1197_v26  ;;  %v5468_v18 = vld [vmem:[%s6457_s4 + $0x290] ss:$80 sps:$4 sm:$0xff]   ;;  %v5479_v24 = vld [vmem:[%s6457_s4 + $0x1fc] ss:$80 sps:$4 sm:$0xff]  }
 0x50d   : > { %v5474_v26 = vld [vmem:[%s6457_s4 + $0x1f0] ss:$80 sps:$4 sm:$0xff]  }
 0x50e   : > { %v1202_v30 = vmul.f32 1.442695, %v1199_v28  ;;  %v5477_v28 = vld [vmem:[%s6457_s4 + $0x1f8] ss:$80 sps:$4 sm:$0xff]  }
 0x510   : > { %5772 = vpow2.f32 %v1202_v30  ;;  %v5482_v30 = vld [vmem:[%s6457_s4 + $0x154] ss:$80 sps:$4 sm:$0xff]  }
 0x519   : > { %v5771_v32 = vpop.eup %5770 }
 0x51a   : > { %5180 = vmatprep.mubr.f32.mxu1 %v5771_v32 }
 0x51d   : > { %v5773_v34 = vpop.eup %5772 }
 0x51e   : > { %5181 = vmatmul.mubr.f32.vlgmr.msra.gmra.mxu1 %v5773_v34 }
 0x51f   : > { %5184 = vmatpush3.msra.mxu1 %v6528_v11  ;;  %5215 = vmatprep.mubr.f32.mxu1 %v5771_v32  ;;  %v5442_v11 = vld [vmem:[%s6457_s4 + $0x46c] ss:$80 sps:$4 sm:$0xff]  }
 0x520   : > { %5185 = vmatprep.subr.mxu1 %v6530_v14  ;;  %5219 = vmatpush3.bf16.msra.mxu0 %v5442_v11  ;;  %v5485_v32 = vld [vmem:[%s6457_s4 + $0x15c] ss:$80 sps:$4 sm:$0xff]   ;;  %v5483_v11 = vld [vmem:[%s6457_s4 + $0x158] ss:$80 sps:$4 sm:$0xff]  }
 0x521   : > { %5186 = vmatpush3.msra.mxu1 %v6530_v14  ;;  %v5443_v14 = vld [vmem:[%s6457_s4 + $0x3cc] ss:$80 sps:$4 sm:$0xff]   ;;  %5220 = vmatprep.subr.bf16.mxu0 %v6137_v54 }
 0x522   : > { %5187 = vmatprep.subr.mxu1 %v6534_v17 }
 0x523   : > { %5188 = vmatpush3.msra.mxu1 %v6534_v17  ;;  %v5444_v17 = vld [vmem:[%s6457_s4 + $0x32c] ss:$80 sps:$4 sm:$0xff]  }
 0x524   : > { %5189 = vmatprep.subr.mxu1 %v6537_v19  ;;  %5221 = vmatpush3.bf16.msra.mxu0 %v5443_v14  ;;  %v5488_v14 = vld [vmem:[%s6457_s4 + $0xb4] ss:$80 sps:$4 sm:$0xff]  }
 0x525   : > { %5190 = vmatpush3.msra.mxu1 %v6537_v19  ;;  %5222 = vmatprep.subr.bf16.mxu0 %v6137_v54  ;;  %v5445_v19 = vld [vmem:[%s6457_s4 + $0x28c] ss:$80 sps:$4 sm:$0xff]  }
 0x526   : > { %5191 = vmatprep.subr.mxu1 %v6540_v21 }
 0x527   : > { %5192 = vmatpush3.msra.mxu1 %v6540_v21  ;;  %v5446_v21 = vld [vmem:[%s6457_s4 + $0x1ec] ss:$80 sps:$4 sm:$0xff]  }
 0x528   : > { %5193 = vmatprep.subr.mxu1 %v6543_v23  ;;  %5223 = vmatpush3.bf16.msra.mxu0 %v5444_v17  ;;  %v5491_v17 = vld [vmem:[%s6457_s4 + $0xbc] ss:$80 sps:$4 sm:$0xff]  }
 0x529   : > { %5194 = vmatpush3.msra.mxu1 %v6543_v23  ;;  %5224 = vmatprep.subr.bf16.mxu0 %v6137_v54  ;;  %v5447_v23 = vld [vmem:[%s6457_s4 + $0x14c] ss:$80 sps:$4 sm:$0xff]  }
 0x52a   : > { %5195 = vmatprep.subr.mxu1 %v6546_v25 }
 0x52b   : > { %5196 = vmatpush3.msra.mxu1 %v6546_v25  ;;  %v5448_v25 = vld [vmem:[%s6457_s4 + $0xac] ss:$80 sps:$4 sm:$0xff]  }
 0x52c   : > { %5197 = vmatprep.subr.mxu1 %v6549_v27  ;;  %5225 = vmatpush3.bf16.msra.mxu0 %v5445_v19  ;;  %v5486_v19 = vld [vmem:[%s6457_s4 + $0xb0] ss:$80 sps:$4 sm:$0xff]  }
 0x52d   : > { %5198 = vmatpush3.msra.mxu1 %v6549_v27  ;;  %5226 = vmatprep.subr.bf16.mxu0 %v6137_v54  ;;  %v5449_v27 = vld [vmem:[%s6457_s4 + $0xc] ss:$80 sps:$4 sm:$0xff]  }
 0x52e   : > { %5199 = vmatprep.subr.mxu1 %v6552_v29 }
 0x52f   : > { %5200 = vmatpush3.msra.mxu1 %v6552_v29 }
 0x530   : > { %5201 = vmatprep.subr.mxu1 %v6555_v31  ;;  %5227 = vmatpush3.bf16.msra.mxu0 %v5446_v21  ;;  %v5489_v21 = vld [vmem:[%s6457_s4 + $0xb8] ss:$80 sps:$4 sm:$0xff]  }
 0x531   : > { %5202 = vmatpush3.msra.mxu1 %v6555_v31  ;;  %5228 = vmatprep.subr.bf16.mxu0 %v6137_v54 }
 0x532   : > { %5203 = vmatprep.subr.mxu1 %v6558_v33 }
 0x533   : > { %5204 = vmatpush3.msra.mxu1 %v6558_v33 }
 0x534   : > { %5205 = vmatprep.subr.mxu1 %v6561_v36  ;;  %5229 = vmatpush3.bf16.msra.mxu0 %v5447_v23  ;;  %v5494_v23 = vld [vmem:[%s6457_s4 + $0x14] ss:$80 sps:$4 sm:$0xff]  }
 0x535   : > { %5206 = vmatpush3.msra.mxu1 %v6561_v36  ;;  %5230 = vmatprep.subr.bf16.mxu0 %v6137_v54 }
 0x536   : > { %5207 = vmatprep.subr.mxu1 %v6564_v38 }
 0x537   : > { %5208 = vmatpush3.msra.mxu1 %v6564_v38 }
 0x538   : > { %5209 = vmatprep.subr.mxu1 %v6567_v40  ;;  %5231 = vmatpush3.bf16.msra.mxu0 %v5448_v25  ;;  %v5497_v25 = vld [vmem:[%s6457_s4 + $0x1c] ss:$80 sps:$4 sm:$0xff]  }
 0x539   : > { %5210 = vmatpush3.msra.mxu1 %v6567_v40  ;;  %5232 = vmatprep.subr.bf16.mxu0 %v6137_v54 }
 0x53a   : > { %5211 = vmatprep.subr.mxu1 %v6570_v42 }
 0x53b   : > { %5212 = vmatpush3.msra.mxu1 %v6570_v42  ;;  %v4507_v42 = vld [vmem:[%s6465_s25 + $0x3] ss:$0 sm:$0xff] }
 0x53c   : > { %5213 = vmatprep.subr.mxu1 %v6573_v44  ;;  %5233 = vmatpush3.bf16.msra.mxu0 %v5449_v27  ;;  %v5492_v27 = vld [vmem:[%s6457_s4 + $0x10] ss:$80 sps:$4 sm:$0xff]  }
 0x53d   : > { %5214 = vmatpush3.msra.mxu1 %v6573_v44  ;;  %2410 = vmatprep.subr.bf16.mxu0 %v5455_v57  ;;  %v5509_v57 = vld [vmem:[%s6457_s4 + $0x3ec] ss:$80 sps:$4 sm:$0xff]  }
 0x53e   : > { %5216 = vmatmul.mubr.f32.vlgmr.msra.gmra.mxu1 %v5773_v34  ;;  %2367 = vmatprep.subr.bf16.mxu1 %v5452_v55  ;;  %v5480_v34 = vld [vmem:[%s6457_s4 + $0x150] ss:$80 sps:$4 sm:$0xff]  }
 0x53f   : > { %2399 = vmatprep.mubr.bf16.mxu1 %v6136_v35  ;;  %2368 = vmatpush1.bf16.msra.mxu1 %v5450_v53  ;;  %v5501_v53 = vld [vmem:[%s6457_s4 + $0x488] ss:$80 sps:$4 sm:$0xff]  }
 0x540   : > { %2369 = vmatprep.subr.bf16.mxu1 %v5458_v5  ;;  %v5516_v5 = vld [vmem:[%s6457_s4 + $0x2a0] ss:$80 sps:$4 sm:$0xff]  }
 0x543   : > { %2370 = vmatpush1.bf16.msra.mxu1 %v5456_v7  ;;  %v5524_v7 = vld [vmem:[%s6457_s4 + $0x204] ss:$80 sps:$4 sm:$0xff]  }
 0x544   : > { %2371 = vmatprep.subr.bf16.mxu1 %v5464_v9  ;;  %v5522_v9 = vld [vmem:[%s6457_s4 + $0x200] ss:$80 sps:$4 sm:$0xff]  }
 0x547   : > { %2372 = vmatpush1.bf16.msra.mxu1 %v5462_v12  ;;  %v5530_v12 = vld [vmem:[%s6457_s4 + $0x164] ss:$80 sps:$4 sm:$0xff]  }
 0x548   : > { %2373 = vmatprep.subr.bf16.mxu1 %v5470_v15  ;;  %v5528_v15 = vld [vmem:[%s6457_s4 + $0x160] ss:$80 sps:$4 sm:$0xff]  }
 0x54b   : > { %2374 = vmatpush1.bf16.msra.mxu1 %v5468_v18  ;;  %v5536_v18 = vld [vmem:[%s6457_s4 + $0xc4] ss:$80 sps:$4 sm:$0xff]  }
 0x54c   : > { %2375 = vmatprep.subr.bf16.mxu1 %v5476_v22  ;;  %v5534_v22 = vld [vmem:[%s6457_s4 + $0xc0] ss:$80 sps:$4 sm:$0xff]  }
 0x54f   : > { %2376 = vmatpush1.bf16.msra.mxu1 %v5474_v26  ;;  %v5542_v26 = vld [vmem:[%s6457_s4 + $0x24] ss:$80 sps:$4 sm:$0xff]  }
 0x550   : > { %2377 = vmatprep.subr.bf16.mxu1 %v5482_v30  ;;  %v5540_v30 = vld [vmem:[%s6457_s4 + $0x20] ss:$80 sps:$4 sm:$0xff]  }
 0x553   : > { %2378 = vmatpush1.bf16.msra.mxu1 %v5480_v34  ;;  %v5548_v34 = vld [vmem:[%s6457_s4 + $0x494] ss:$80 sps:$4 sm:$0xff]  }
 0x554   : > { %2379 = vmatprep.subr.bf16.mxu1 %v5488_v14  ;;  %v5546_v14 = vld [vmem:[%s6457_s4 + $0x490] ss:$80 sps:$4 sm:$0xff]  }
 0x557   : > { %2380 = vmatpush1.bf16.msra.mxu1 %v5486_v19  ;;  %v5554_v19 = vld [vmem:[%s6457_s4 + $0x3f4] ss:$80 sps:$4 sm:$0xff]  }
 0x558   : > { %2381 = vmatprep.subr.bf16.mxu1 %v5494_v23  ;;  %v5552_v23 = vld [vmem:[%s6457_s4 + $0x3f0] ss:$80 sps:$4 sm:$0xff]  }
 0x55b   : > { %2382 = vmatpush1.bf16.msra.mxu1 %v5492_v27  ;;  %v5560_v27 = vld [vmem:[%s6457_s4 + $0x354] ss:$80 sps:$4 sm:$0xff]  }
 0x5de   : > { %v5182_v29 = vpop.f32.mrf.mxu1 }
 0x5e0   : > { %v1270_v31 = vpop.f32.mrf.mxu1 }
 0x5fe   : > { %v5217_v33 = vpop.f32.mrf.mxu1 }
 0x5ff   : > { %5774 = vrcp.f32 %v5217_v33  ;;  %v5503_v33 = vld [vmem:[%s6457_s4 + $0x48c] ss:$80 sps:$4 sm:$0xff]  }
 0x600   : > { %v1345_v36 = vpop.f32.mrf.mxu1 }
 0x601   : > { %5776 = vrcp.f32 %v1345_v36 }
 0x60c   : > { %v5775_v37 = vpop.eup %5774 }
 0x60d   : > { %v1357_v40 = vmul.f32 %v5775_v37, %v5182_v29  ;;  %v5495_v29 = vld [vmem:[%s6457_s4 + $0x18] ss:$80 sps:$4 sm:$0xff]  }
 0x60e   : > { %v5777_v38 = vpop.eup %5776 }
 0x60f   : > { %v1356_v39 = vmul.f32 %v5777_v38, %v1270_v31  ;;  %v5500_v31 = vld [vmem:[%s6457_s4 + $0x484] ss:$80 sps:$4 sm:$0xff]  }
 0x610   : > { %2453 = vmatprep.subr.bf16.mxu1 %v5500_v31  ;;  %v5558_v31 = vld [vmem:[%s6457_s4 + $0x350] ss:$80 sps:$4 sm:$0xff]  }
 0x611   : > { %v1358_v41 = vpack.c.bf16 %v1357_v40, %v1356_v39 }
 0x613   : > { %5235 = vmatmul.mubr.bf16.vlgmr.msra.gmra.mxu0 %v1358_v41 }
 0x614   : > { %2442 = vmatprep.mubr.bf16.mxu0 %v6136_v35  ;;  %2411 = vmatpush1.bf16.msra.mxu0 %v5453_v56  ;;  %v5506_v56 = vld [vmem:[%s6457_s4 + $0x3e4] ss:$80 sps:$4 sm:$0xff]  }
 0x615   : > { %2412 = vmatprep.subr.bf16.mxu0 %v5461_v6  ;;  %v5519_v6 = vld [vmem:[%s6457_s4 + $0x2a8] ss:$80 sps:$4 sm:$0xff]  }
 0x618   : > { %2413 = vmatpush1.bf16.msra.mxu0 %v5459_v8  ;;  %v5527_v8 = vld [vmem:[%s6457_s4 + $0x20c] ss:$80 sps:$4 sm:$0xff]  }
 0x619   : > { %2414 = vmatprep.subr.bf16.mxu0 %v5467_v10  ;;  %v5525_v10 = vld [vmem:[%s6457_s4 + $0x208] ss:$80 sps:$4 sm:$0xff]  }
 0x61c   : > { %2415 = vmatpush1.bf16.msra.mxu0 %v5465_v13  ;;  %v5533_v13 = vld [vmem:[%s6457_s4 + $0x16c] ss:$80 sps:$4 sm:$0xff]  }
 0x61d   : > { %2416 = vmatprep.subr.bf16.mxu0 %v5473_v16  ;;  %v5531_v16 = vld [vmem:[%s6457_s4 + $0x168] ss:$80 sps:$4 sm:$0xff]  }
 0x620   : > { %2417 = vmatpush1.bf16.msra.mxu0 %v5471_v20  ;;  %v5539_v20 = vld [vmem:[%s6457_s4 + $0xcc] ss:$80 sps:$4 sm:$0xff]  }
 0x621   : > { %2418 = vmatprep.subr.bf16.mxu0 %v5479_v24  ;;  %v5537_v24 = vld [vmem:[%s6457_s4 + $0xc8] ss:$80 sps:$4 sm:$0xff]  }
 0x624   : > { %2419 = vmatpush1.bf16.msra.mxu0 %v5477_v28  ;;  %v5545_v28 = vld [vmem:[%s6457_s4 + $0x2c] ss:$80 sps:$4 sm:$0xff]  }
 0x625   : > { %2420 = vmatprep.subr.bf16.mxu0 %v5485_v32  ;;  %v5543_v32 = vld [vmem:[%s6457_s4 + $0x28] ss:$80 sps:$4 sm:$0xff]  }
 0x628   : > { %2421 = vmatpush1.bf16.msra.mxu0 %v5483_v11  ;;  %v5551_v11 = vld [vmem:[%s6457_s4 + $0x49c] ss:$80 sps:$4 sm:$0xff]  }
 0x629   : > { %2422 = vmatprep.subr.bf16.mxu0 %v5491_v17  ;;  %v5549_v17 = vld [vmem:[%s6457_s4 + $0x498] ss:$80 sps:$4 sm:$0xff]  }
 0x62c   : > { %2423 = vmatpush1.bf16.msra.mxu0 %v5489_v21  ;;  %v5557_v21 = vld [vmem:[%s6457_s4 + $0x3fc] ss:$80 sps:$4 sm:$0xff]  }
 0x62d   : > { %2424 = vmatprep.subr.bf16.mxu0 %v5497_v25  ;;  %v5555_v25 = vld [vmem:[%s6457_s4 + $0x3f8] ss:$80 sps:$4 sm:$0xff]  }
 0x630   : > { %2425 = vmatpush1.bf16.msra.mxu0 %v5495_v29  ;;  %v5563_v29 = vld [vmem:[%s6457_s4 + $0x35c] ss:$80 sps:$4 sm:$0xff]  }
 0x631   : > { %2496 = vmatprep.subr.bf16.mxu0 %v5503_v33  ;;  %v5561_v33 = vld [vmem:[%s6457_s4 + $0x358] ss:$80 sps:$4 sm:$0xff]  }
 0x6d3   : > { %v1464_v54 = vpop.f32.mrf.mxu0 }
 0x6d4   : > { %v1465_v43 = vadd.f32 %v4507_v42, %v1464_v54 }
 0x6d5   : > { %v5236_v44 = vpop.f32.mrf.mxu0 }
 0x6d6   : > { %v1471_v47 = vadd.f32 %v5786_v45, %v1465_v43  ;;  %v4516_v43 = vld [vmem:[%s6465_s25 + $0x4] ss:$0 sm:$0xff] }
 0x6d7   : > { %v1467_v48 = vpop.f32.mrf.mxu0 }
 0x6d8   : > { %v1468_v49 = vadd.f32 %v4507_v42, %v1467_v48  ;;  %1475 = vadd.xlane.f32.xlu1 %v1471_v47  ;;  %v4517_v48 = vld [vmem:[%s6465_s25 + $0x5] ss:$0 sm:$0xff] }
 0x6d9   : > { %v5237_v50 = vpop.f32.mrf.mxu0 }
 0x6da   : > { %v1472_v52 = vadd.f32 %v5787_v51, %v1468_v49 }
 0x6dc   : > { %1477 = vadd.xlane.f32.xlu1 %v1472_v52 }
 0x761   : > { %v1476_v58 = vpop.xlane.xlu1 %1475 }
 0x762   : > { %v1480_v59 = vmul.f32 0.0078125, %v1476_v58  ;;  %v5504_v58 = vld [vmem:[%s6457_s4 + $0x3e0] ss:$80 sps:$4 sm:$0xff]  }
 0x764   : > { %v6655_v60 = vsub.f32 %v1471_v47, %v1480_v59  ;;  %v5507_v59 = vld [vmem:[%s6457_s4 + $0x3e8] ss:$80 sps:$4 sm:$0xff]  }
 0x765   : > { %v1478_v61 = vpop.xlane.xlu1 %1477 }
 0x766   : > { %v1481_v62 = vmul.f32 0.0078125, %v1478_v61  ;;  %v1484_v1 = vmul.f32 %v6655_v60, %v6655_v60  ;;  %v5515_v61 = vld [vmem:[%s6457_s4 + $0x34c] ss:$80 sps:$4 sm:$0xff]  }
 0x768   : > { %v6659_v2 = vsub.f32 %v1472_v52, %v1481_v62  ;;  %1486 = vadd.xlane.f32.xlu0 %v1484_v1  ;;  %v5498_v52 = vld [vmem:[%s6457_s4 + $0x480] ss:$80 sps:$4 sm:$0xff]   ;;  %v5513_v1 = vld [vmem:[%s6457_s4 + $0x348] ss:$80 sps:$4 sm:$0xff]  }
 0x769   : > { %v5510_v62 = vld [vmem:[%s6457_s4 + $0x340] ss:$80 sps:$4 sm:$0xff]  }
 0x76a   : > { %v1485_v4 = vmul.f32 %v6659_v2, %v6659_v2 }
 0x76c   : > { %1488 = vadd.xlane.f32.xlu1 %v1485_v4  ;;  %v5521_v4 = vld [vmem:[%s6457_s4 + $0x2ac] ss:$80 sps:$4 sm:$0xff]  }
 0x7f1   : > { %v1487_v36 = vpop.xlane.xlu0 %1486 }
 0x7f2   : > { %v1490_v37 = vmul.f32 0.0078125, %v1487_v36  ;;  %v5566_v36 = vld [vmem:[%s6457_s4 + $0x2b4] ss:$80 sps:$4 sm:$0xff]  }
 0x7f4   : > { %v1492_v38 = vadd.f32 1e-05, %v1490_v37  ;;  %v5569_v37 = vld [vmem:[%s6457_s4 + $0x2bc] ss:$80 sps:$4 sm:$0xff]  }
 0x7f5   : > { %v1489_v39 = vpop.xlane.xlu1 %1488 }
 0x7f6   : > { %5778 = vrsqrt.f32 %v1492_v38  ;;  %v1491_v40 = vmul.f32 0.0078125, %v1489_v39  ;;  %v5564_v38 = vld [vmem:[%s6457_s4 + $0x2b0] ss:$80 sps:$4 sm:$0xff]   ;;  %v5567_v39 = vld [vmem:[%s6457_s4 + $0x2b8] ss:$80 sps:$4 sm:$0xff]  }
 0x7f8   : > { %v1493_v41 = vadd.f32 1e-05, %v1491_v40  ;;  %v5572_v40 = vld [vmem:[%s6457_s4 + $0x214] ss:$80 sps:$4 sm:$0xff]  }
 0x7fa   : > { %5780 = vrsqrt.f32 %v1493_v41  ;;  %v5575_v41 = vld [vmem:[%s6457_s4 + $0x21c] ss:$80 sps:$4 sm:$0xff]  }
 0x803   : > { %v5779_v42 = vpop.eup %5778 }
 0x804   : > { %v1496_v54 = vmul.f32 %v5779_v42, %v6655_v60  ;;  %v5512_v60 = vld [vmem:[%s6457_s4 + $0x344] ss:$80 sps:$4 sm:$0xff]   ;;  %v5570_v42 = vld [vmem:[%s6457_s4 + $0x210] ss:$80 sps:$4 sm:$0xff]  }
 0x806   : > { %v1504_v45 = vmul.f32 %v4516_v43, %v1496_v54  ;;  %v5573_v54 = vld [vmem:[%s6457_s4 + $0x218] ss:$80 sps:$4 sm:$0xff]  }
 0x807   : > { %v5781_v44 = vpop.eup %5780 }
 0x808   : > { %v1497_v47 = vmul.f32 %v5781_v44, %v6659_v2  ;;  %v6697_v50 = vadd.f32 %v4517_v48, %v1504_v45  ;;  %v5518_v2 = vld [vmem:[%s6457_s4 + $0x2a4] ss:$80 sps:$4 sm:$0xff]   ;;  %v5581_v44 = vld [vmem:[%s6457_s4 + $0x17c] ss:$80 sps:$4 sm:$0xff]   ;;  %v5576_v45 = vld [vmem:[%s6457_s4 + $0x170] ss:$80 sps:$4 sm:$0xff]  }
 0x80a   : > { %v1505_v49 = vmul.f32 %v4516_v43, %v1497_v47  ;;  %v5578_v43 = vld [vmem:[%s6457_s4 + $0x174] ss:$80 sps:$4 sm:$0xff]   ;;  %v5579_v47 = vld [vmem:[%s6457_s4 + $0x178] ss:$80 sps:$4 sm:$0xff]  }
 0x80c   : > { %v6699_v51 = vadd.f32 %v4517_v48, %v1505_v49  ;;  %v5584_v48 = vld [vmem:[%s6457_s4 + $0xd4] ss:$80 sps:$4 sm:$0xff]   ;;  %v5587_v49 = vld [vmem:[%s6457_s4 + $0xdc] ss:$80 sps:$4 sm:$0xff]  }
 0x80e   : > { %v6705_v55 = vpack.c.bf16 %v6699_v51, %v6697_v50 }
 0x810   : > { %2400 = vmatmul.mubr.bf16.vlgmr.msra.gmra.mxu1 %v6705_v55  ;;  %2443 = vmatmul.mubr.bf16.vlgmr.msra.gmra.mxu0 %v6705_v55 }
 0x811   : > { %2454 = vmatpush1.bf16.msra.mxu1 %v5498_v52  ;;  %2497 = vmatpush1.bf16.msra.mxu0 %v5501_v53  ;;  %v5582_v52 = vld [vmem:[%s6457_s4 + $0xd0] ss:$80 sps:$4 sm:$0xff]   ;;  %v5585_v53 = vld [vmem:[%s6457_s4 + $0xd8] ss:$80 sps:$4 sm:$0xff]  }
 0x812   : > { %2455 = vmatprep.subr.bf16.mxu1 %v5506_v56  ;;  %2498 = vmatprep.subr.bf16.mxu0 %v5509_v57  ;;  %v5590_v56 = vld [vmem:[%s6457_s4 + $0x34] ss:$80 sps:$4 sm:$0xff]   ;;  %v5593_v57 = vld [vmem:[%s6457_s4 + $0x3c] ss:$80 sps:$4 sm:$0xff]  }
 0x813   : > { %2485 = vmatprep.mubr.bf16.mxu1 %v6136_v35  ;;  %2528 = vmatprep.mubr.bf16.mxu0 %v6136_v35 }
 0x815   : > { %2456 = vmatpush1.bf16.msra.mxu1 %v5504_v58  ;;  %2499 = vmatpush1.bf16.msra.mxu0 %v5507_v59  ;;  %v5588_v58 = vld [vmem:[%s6457_s4 + $0x30] ss:$80 sps:$4 sm:$0xff]   ;;  %v5591_v59 = vld [vmem:[%s6457_s4 + $0x38] ss:$80 sps:$4 sm:$0xff]  }
 0x816   : > { %2457 = vmatprep.subr.bf16.mxu1 %v5512_v60  ;;  %2500 = vmatprep.subr.bf16.mxu0 %v5515_v61  ;;  %v5596_v60 = vld [vmem:[%s6457_s4 + $0x4a4] ss:$80 sps:$4 sm:$0xff]   ;;  %v5599_v61 = vld [vmem:[%s6457_s4 + $0x4ac] ss:$80 sps:$4 sm:$0xff]  }
 0x819   : > { %2458 = vmatpush1.bf16.msra.mxu1 %v5510_v62  ;;  %2501 = vmatpush1.bf16.msra.mxu0 %v5513_v1  ;;  %v5594_v62 = vld [vmem:[%s6457_s4 + $0x4a0] ss:$80 sps:$4 sm:$0xff]   ;;  %v5597_v1 = vld [vmem:[%s6457_s4 + $0x4a8] ss:$80 sps:$4 sm:$0xff]  }
 0x81a   : > { %2459 = vmatprep.subr.bf16.mxu1 %v5518_v2  ;;  %2502 = vmatprep.subr.bf16.mxu0 %v5521_v4  ;;  %v5602_v2 = vld [vmem:[%s6457_s4 + $0x404] ss:$80 sps:$4 sm:$0xff]   ;;  %v5605_v4 = vld [vmem:[%s6457_s4 + $0x40c] ss:$80 sps:$4 sm:$0xff]  }
 0x81d   : > { %2460 = vmatpush1.bf16.msra.mxu1 %v5516_v5  ;;  %2503 = vmatpush1.bf16.msra.mxu0 %v5519_v6  ;;  %v5600_v5 = vld [vmem:[%s6457_s4 + $0x400] ss:$80 sps:$4 sm:$0xff]   ;;  %v5603_v6 = vld [vmem:[%s6457_s4 + $0x408] ss:$80 sps:$4 sm:$0xff]  }
 0x81e   : > { %2461 = vmatprep.subr.bf16.mxu1 %v5524_v7  ;;  %2504 = vmatprep.subr.bf16.mxu0 %v5527_v8  ;;  %v5608_v7 = vld [vmem:[%s6457_s4 + $0x364] ss:$80 sps:$4 sm:$0xff]   ;;  %v5611_v8 = vld [vmem:[%s6457_s4 + $0x36c] ss:$80 sps:$4 sm:$0xff]  }
 0x821   : > { %2462 = vmatpush1.bf16.msra.mxu1 %v5522_v9  ;;  %2505 = vmatpush1.bf16.msra.mxu0 %v5525_v10  ;;  %v5606_v9 = vld [vmem:[%s6457_s4 + $0x360] ss:$80 sps:$4 sm:$0xff]   ;;  %v5609_v10 = vld [vmem:[%s6457_s4 + $0x368] ss:$80 sps:$4 sm:$0xff]  }
 0x822   : > { %2463 = vmatprep.subr.bf16.mxu1 %v5530_v12  ;;  %2506 = vmatprep.subr.bf16.mxu0 %v5533_v13  ;;  %v5614_v12 = vld [vmem:[%s6457_s4 + $0x2c4] ss:$80 sps:$4 sm:$0xff]   ;;  %v5617_v13 = vld [vmem:[%s6457_s4 + $0x2cc] ss:$80 sps:$4 sm:$0xff]  }
 0x825   : > { %2464 = vmatpush1.bf16.msra.mxu1 %v5528_v15  ;;  %2507 = vmatpush1.bf16.msra.mxu0 %v5531_v16  ;;  %v5612_v15 = vld [vmem:[%s6457_s4 + $0x2c0] ss:$80 sps:$4 sm:$0xff]   ;;  %v5615_v16 = vld [vmem:[%s6457_s4 + $0x2c8] ss:$80 sps:$4 sm:$0xff]  }
 0x826   : > { %2465 = vmatprep.subr.bf16.mxu1 %v5536_v18  ;;  %2508 = vmatprep.subr.bf16.mxu0 %v5539_v20  ;;  %v5623_v18 = vld [vmem:[%s6457_s4 + $0x22c] ss:$80 sps:$4 sm:$0xff]   ;;  %v5618_v20 = vld [vmem:[%s6457_s4 + $0x220] ss:$80 sps:$4 sm:$0xff]  }
 0x829   : > { %2466 = vmatpush1.bf16.msra.mxu1 %v5534_v22  ;;  %2509 = vmatpush1.bf16.msra.mxu0 %v5537_v24  ;;  %v5621_v22 = vld [vmem:[%s6457_s4 + $0x228] ss:$80 sps:$4 sm:$0xff]   ;;  %v5626_v24 = vld [vmem:[%s6457_s4 + $0x184] ss:$80 sps:$4 sm:$0xff]  }
 0x82a   : > { %2467 = vmatprep.subr.bf16.mxu1 %v5542_v26  ;;  %2510 = vmatprep.subr.bf16.mxu0 %v5545_v28  ;;  %v5629_v26 = vld [vmem:[%s6457_s4 + $0x18c] ss:$80 sps:$4 sm:$0xff]   ;;  %v5624_v28 = vld [vmem:[%s6457_s4 + $0x180] ss:$80 sps:$4 sm:$0xff]  }
 0x82d   : > { %2468 = vmatpush1.bf16.msra.mxu1 %v5540_v30  ;;  %2511 = vmatpush1.bf16.msra.mxu0 %v5543_v32  ;;  %v5627_v30 = vld [vmem:[%s6457_s4 + $0x188] ss:$80 sps:$4 sm:$0xff]   ;;  %v5632_v32 = vld [vmem:[%s6457_s4 + $0xe4] ss:$80 sps:$4 sm:$0xff]  }
 0x82e   : > { %2539 = vmatprep.subr.bf16.mxu1 %v5548_v34  ;;  %2582 = vmatprep.subr.bf16.mxu0 %v5551_v11  ;;  %v5635_v34 = vld [vmem:[%s6457_s4 + $0xec] ss:$80 sps:$4 sm:$0xff]   ;;  %v5630_v11 = vld [vmem:[%s6457_s4 + $0xe0] ss:$80 sps:$4 sm:$0xff]  }
 0x830   : > { %2486 = vmatmul.mubr.bf16.vlgmr.msra.gmra.mxu1 %v6705_v55  ;;  %2529 = vmatmul.mubr.bf16.vlgmr.msra.gmra.mxu0 %v6705_v55 }
 0x831   : > { %2540 = vmatpush1.bf16.msra.mxu1 %v5546_v14  ;;  %2583 = vmatpush1.bf16.msra.mxu0 %v5549_v17  ;;  %v5633_v14 = vld [vmem:[%s6457_s4 + $0xe8] ss:$80 sps:$4 sm:$0xff]   ;;  %v5638_v17 = vld [vmem:[%s6457_s4 + $0x44] ss:$80 sps:$4 sm:$0xff]  }
 0x832   : > { %2541 = vmatprep.subr.bf16.mxu1 %v5554_v19  ;;  %2584 = vmatprep.subr.bf16.mxu0 %v5557_v21  ;;  %v5641_v19 = vld [vmem:[%s6457_s4 + $0x4c] ss:$80 sps:$4 sm:$0xff]   ;;  %v5636_v21 = vld [vmem:[%s6457_s4 + $0x40] ss:$80 sps:$4 sm:$0xff]  }
 0x833   : > { %2571 = vmatprep.mubr.bf16.mxu1 %v6136_v35  ;;  %2614 = vmatprep.mubr.bf16.mxu0 %v6136_v35 }
 0x835   : > { %2542 = vmatpush1.bf16.msra.mxu1 %v5552_v23  ;;  %2585 = vmatpush1.bf16.msra.mxu0 %v5555_v25  ;;  %v5639_v23 = vld [vmem:[%s6457_s4 + $0x48] ss:$80 sps:$4 sm:$0xff]  }
 0x836   : > { %2543 = vmatprep.subr.bf16.mxu1 %v5560_v27  ;;  %2586 = vmatprep.subr.bf16.mxu0 %v5563_v29  ;;  %v5642_v25 = vld [vmem:[%s6463_s21 + $0x78] sm:$0xff]  }
 0x837   : > { %v5643_v27 = vld [vmem:[%s6463_s21 + $0xf8] sm:$0xff]  }
 0x838   : > { %v5644_v29 = vld [vmem:[%s6463_s21 + $0x38] sm:$0xff]  }
 0x839   : > { %2544 = vmatpush1.bf16.msra.mxu1 %v5558_v31  ;;  %2587 = vmatpush1.bf16.msra.mxu0 %v5561_v33  ;;  %v5645_v31 = vld [vmem:[%s6463_s21 + $0xb8] sm:$0xff]   ;;  %v5646_v33 = vld [vmem:[%s6463_s21 + $0x70] sm:$0xff]  }
 0x83a   : > { %2545 = vmatprep.subr.bf16.mxu1 %v5566_v36  ;;  %2588 = vmatprep.subr.bf16.mxu0 %v5569_v37  ;;  %v5647_v36 = vld [vmem:[%s6463_s21 + $0xf0] sm:$0xff]  }
 0x83b   : > { %v5648_v37 = vld [vmem:[%s6463_s21 + $0x30] sm:$0xff]  }
 0x83d   : > { %2546 = vmatpush1.bf16.msra.mxu1 %v5564_v38  ;;  %2589 = vmatpush1.bf16.msra.mxu0 %v5567_v39  ;;  %v5649_v38 = vld [vmem:[%s6463_s21 + $0xb0] sm:$0xff]   ;;  %v5650_v39 = vld [vmem:[%s6463_s21 + $0x68] sm:$0xff]  }
 0x83e   : > { %2547 = vmatprep.subr.bf16.mxu1 %v5572_v40  ;;  %2590 = vmatprep.subr.bf16.mxu0 %v5575_v41  ;;  %v5651_v40 = vld [vmem:[%s6463_s21 + $0xe8] sm:$0xff]  }
 0x83f   : > { %v5652_v41 = vld [vmem:[%s6463_s21 + $0x28] sm:$0xff]  }
 0x841   : > { %2548 = vmatpush1.bf16.msra.mxu1 %v5570_v42  ;;  %2591 = vmatpush1.bf16.msra.mxu0 %v5573_v54  ;;  %v5653_v42 = vld [vmem:[%s6463_s21 + $0xa8] sm:$0xff]   ;;  %v5655_v54 = vld [vmem:[%s6463_s21 + $0xe0] sm:$0xff]  }
 0x842   : > { %2549 = vmatprep.subr.bf16.mxu1 %v5578_v43  ;;  %2592 = vmatprep.subr.bf16.mxu0 %v5581_v44  ;;  %v5656_v43 = vld [vmem:[%s6463_s21 + $0x20] sm:$0xff]  }
 0x843   : > { %v5657_v44 = vld [vmem:[%s6463_s21 + $0xa0] sm:$0xff]  }
 0x845   : > { %2550 = vmatpush1.bf16.msra.mxu1 %v5576_v45  ;;  %2593 = vmatpush1.bf16.msra.mxu0 %v5579_v47  ;;  %v5658_v45 = vld [vmem:[%s6463_s21 + $0x58] sm:$0xff]  }
 0x846   : > { %2551 = vmatprep.subr.bf16.mxu1 %v5584_v48  ;;  %2594 = vmatprep.subr.bf16.mxu0 %v5587_v49  ;;  %v5659_v47 = vld [vmem:[%s6463_s21 + $0xd8] sm:$0xff]  }
 0x847   : > { %v5660_v48 = vld [vmem:[%s6463_s21 + $0x18] sm:$0xff]  }
 0x848   : > { %v5661_v49 = vld [vmem:[%s6463_s21 + $0x98] sm:$0xff]  }
 0x849   : > { %2552 = vmatpush1.bf16.msra.mxu1 %v5582_v52  ;;  %2595 = vmatpush1.bf16.msra.mxu0 %v5585_v53  ;;  %v5662_v52 = vld [vmem:[%s6463_s21 + $0x50] sm:$0xff]  }
 0x84a   : > { %2553 = vmatprep.subr.bf16.mxu1 %v5590_v56  ;;  %2596 = vmatprep.subr.bf16.mxu0 %v5593_v57  ;;  %v5663_v53 = vld [vmem:[%s6463_s21 + $0xd0] sm:$0xff]  }
 0x84b   : > { %v5664_v56 = vld [vmem:[%s6463_s21 + $0x10] sm:$0xff]  }
 0x84c   : > { %v5665_v57 = vld [vmem:[%s6463_s21 + $0x90] sm:$0xff]  }
 0x84d   : > { %2554 = vmatpush1.bf16.msra.mxu1 %v5588_v58  ;;  %2597 = vmatpush1.bf16.msra.mxu0 %v5591_v59  ;;  %v5666_v58 = vld [vmem:[%s6463_s21 + $0x48] sm:$0xff]  }
 0x84e   : > { %2625 = vmatprep.subr.bf16.mxu1 %v5596_v60  ;;  %2668 = vmatprep.subr.bf16.mxu0 %v5599_v61  ;;  %v5667_v59 = vld [vmem:[%s6463_s21 + $0xc8] sm:$0xff]  }
 0x84f   : > { %v5668_v60 = vld [vmem:[%s6463_s21 + $0x8] sm:$0xff]  }
 0x850   : > { %2572 = vmatmul.mubr.bf16.vlgmr.msra.gmra.mxu1 %v6705_v55  ;;  %2615 = vmatmul.mubr.bf16.vlgmr.msra.gmra.mxu0 %v6705_v55  ;;  %v5669_v61 = vld [vmem:[%s6463_s21 + $0x88] sm:$0xff]  }
 0x851   : > { %2626 = vmatpush1.bf16.msra.mxu1 %v5594_v62  ;;  %2669 = vmatpush1.bf16.msra.mxu0 %v5597_v1  ;;  %v5670_v62 = vld [vmem:[%s6463_s21 + $0x40] sm:$0xff]  }
 0x852   : > { %2627 = vmatprep.subr.bf16.mxu1 %v5602_v2  ;;  %2670 = vmatprep.subr.bf16.mxu0 %v5605_v4  ;;  %v5671_v1 = vld [vmem:[%s6463_s21 + $0xc0] sm:$0xff]  }
 0x853   : > { %2657 = vmatprep.mubr.bf16.mxu1 %v6136_v35  ;;  %2700 = vmatprep.mubr.bf16.mxu0 %v6136_v35  ;;  %v5620_v35 = vld [vmem:[%s6457_s4 + $0x224] ss:$80 sps:$4 sm:$0xff]  }
 0x854   : > { %v5672_v2 = vld [vmem:[%s6463_s21] sm:$0xff]  }
 0x855   : > { %2628 = vmatpush1.bf16.msra.mxu1 %v5600_v5  ;;  %2671 = vmatpush1.bf16.msra.mxu0 %v5603_v6  ;;  %v5673_v4 = vld [vmem:[%s6463_s21 + $0x80] sm:$0xff]   ;;  %v5674_v5 = vld [vmem:[%s6463_s21 + $0x178] sm:$0xff]  }
 0x856   : > { %2629 = vmatprep.subr.bf16.mxu1 %v5608_v7  ;;  %2672 = vmatprep.subr.bf16.mxu0 %v5611_v8  ;;  %v5675_v6 = vld [vmem:[%s6463_s21 + $0x1f8] sm:$0xff]   ;;  %v1661_v7 = vsub.s32 3, %v6511_v63 }
 0x857   : > { %v6849_v8 = vld [vmem:[%s6465_s25 + $0x6] sm:$0xff] }
 0x859   : > { %2630 = vmatpush1.bf16.msra.mxu1 %v5606_v9  ;;  %2673 = vmatpush1.bf16.msra.mxu0 %v5609_v10 }
 0x85a   : > { %2631 = vmatprep.subr.bf16.mxu1 %v5614_v12  ;;  %2674 = vmatprep.subr.bf16.mxu0 %v5617_v13  ;;  %v1654_v12 = vrot.slane %v6849_v8, %v6522_v3  ;;  %v1662_v13 = vrot.slane %v6849_v8, %v1661_v7 }
 0x85d   : > { %2632 = vmatpush1.bf16.msra.mxu1 %v5612_v15  ;;  %2675 = vmatpush1.bf16.msra.mxu0 %v5615_v16  ;;  %v1650_v15 = vrot.slane %v6849_v8, %v6514_v0  ;;  %v1658_v16 = vrot.slane %v6849_v8, %v6581_v46 }
 0x85e   : > { %2633 = vmatprep.subr.bf16.mxu1 %v5620_v35  ;;  %2676 = vmatprep.subr.bf16.mxu0 %v5623_v18 }
 0x861   : > { %2634 = vmatpush1.bf16.msra.mxu1 %v5618_v20  ;;  %2677 = vmatpush1.bf16.msra.mxu0 %v5621_v22 }
 0x862   : > { %2635 = vmatprep.subr.bf16.mxu1 %v5626_v24  ;;  %2678 = vmatprep.subr.bf16.mxu0 %v5629_v26 }
 0x865   : > { %2636 = vmatpush1.bf16.msra.mxu1 %v5624_v28  ;;  %2679 = vmatpush1.bf16.msra.mxu0 %v5627_v30 }
 0x866   : > { %2637 = vmatprep.subr.bf16.mxu1 %v5632_v32  ;;  %2680 = vmatprep.subr.bf16.mxu0 %v5635_v34 }
 0x869   : > { %2638 = vmatpush1.bf16.msra.mxu1 %v5630_v11  ;;  %2681 = vmatpush1.bf16.msra.mxu0 %v5633_v14 }
 0x86a   : > { %2639 = vmatprep.subr.bf16.mxu1 %v5638_v17  ;;  %2682 = vmatprep.subr.bf16.mxu0 %v5641_v19 }
 0x86d   : > { %2640 = vmatpush1.bf16.msra.mxu1 %v5636_v21  ;;  %2683 = vmatpush1.bf16.msra.mxu0 %v5639_v23 }
 0x86e   : > { %4876 = vmatprep.subr.bf16.mxu1 %v5642_v25  ;;  %4898 = vmatprep.subr.bf16.mxu0 %v5643_v27 }
 0x870   : > { %2658 = vmatmul.mubr.bf16.vlgmr.msra.gmra.mxu1 %v6705_v55  ;;  %2701 = vmatmul.mubr.bf16.vlgmr.msra.gmra.mxu0 %v6705_v55  ;;  %v5654_v55 = vld [vmem:[%s6463_s21 + $0x60] sm:$0xff]  }
 0x871   : > { %4877 = vmatpush3.bf16.msra.mxu1 %v5644_v29  ;;  %4899 = vmatpush3.bf16.msra.mxu0 %v5645_v31 }
 0x872   : > { %4878 = vmatprep.subr.bf16.mxu1 %v5646_v33  ;;  %4900 = vmatprep.subr.bf16.mxu0 %v5647_v36 }
 0x875   : > { %4879 = vmatpush3.bf16.msra.mxu1 %v5648_v37  ;;  %4901 = vmatpush3.bf16.msra.mxu0 %v5649_v38 }
 0x876   : > { %4880 = vmatprep.subr.bf16.mxu1 %v5650_v39  ;;  %4902 = vmatprep.subr.bf16.mxu0 %v5651_v40  ;;  %v5676_v39 = vld [vmem:[%s6463_s21 + $0x138] sm:$0xff]  }
 0x877   : > { %v5677_v40 = vld [vmem:[%s6463_s21 + $0x1b8] sm:$0xff]  }
 0x879   : > { %4881 = vmatpush3.bf16.msra.mxu1 %v5652_v41  ;;  %4903 = vmatpush3.bf16.msra.mxu0 %v5653_v42 }
 0x87a   : > { %4882 = vmatprep.subr.bf16.mxu1 %v5654_v55  ;;  %4904 = vmatprep.subr.bf16.mxu0 %v5655_v54  ;;  %v5678_v55 = vld [vmem:[%s6463_s21 + $0x170] sm:$0xff]  }
 0x87b   : > { %v5679_v54 = vld [vmem:[%s6463_s21 + $0x1f0] sm:$0xff]  }
 0x87d   : > { %4883 = vmatpush3.bf16.msra.mxu1 %v5656_v43  ;;  %4905 = vmatpush3.bf16.msra.mxu0 %v5657_v44  ;;  %v5680_v43 = vld [vmem:[%s6463_s21 + $0x130] sm:$0xff]  }
 0x87e   : > { %4884 = vmatprep.subr.bf16.mxu1 %v5658_v45  ;;  %4906 = vmatprep.subr.bf16.mxu0 %v5659_v47  ;;  %v5681_v44 = vld [vmem:[%s6463_s21 + $0x1b0] sm:$0xff]   ;;  %v5682_v45 = vld [vmem:[%s6463_s21 + $0x168] sm:$0xff]  }
 0x87f   : > { %v5683_v47 = vld [vmem:[%s6463_s21 + $0x1e8] sm:$0xff]  }
 0x881   : > { %4885 = vmatpush3.bf16.msra.mxu1 %v5660_v48  ;;  %4907 = vmatpush3.bf16.msra.mxu0 %v5661_v49  ;;  %v5684_v48 = vld [vmem:[%s6463_s21 + $0x128] sm:$0xff]  }
 0x882   : > { %4886 = vmatprep.subr.bf16.mxu1 %v5662_v52  ;;  %4908 = vmatprep.subr.bf16.mxu0 %v5663_v53  ;;  %v5685_v49 = vld [vmem:[%s6463_s21 + $0x1a8] sm:$0xff]   ;;  %v5686_v52 = vld [vmem:[%s6463_s21 + $0x160] sm:$0xff]  }
 0x883   : > { %v5687_v53 = vld [vmem:[%s6463_s21 + $0x1e0] sm:$0xff]  }
 0x885   : > { %4887 = vmatpush3.bf16.msra.mxu1 %v5664_v56  ;;  %4909 = vmatpush3.bf16.msra.mxu0 %v5665_v57  ;;  %v5688_v56 = vld [vmem:[%s6463_s21 + $0x120] sm:$0xff]  }
 0x886   : > { %4888 = vmatprep.subr.bf16.mxu1 %v5666_v58  ;;  %4910 = vmatprep.subr.bf16.mxu0 %v5667_v59  ;;  %v5689_v57 = vld [vmem:[%s6463_s21 + $0x1a0] sm:$0xff]   ;;  %v5690_v58 = vld [vmem:[%s6463_s21 + $0x158] sm:$0xff]  }
 0x887   : > { %v5691_v59 = vld [vmem:[%s6463_s21 + $0x1d8] sm:$0xff]  }
 0x889   : > { %4889 = vmatpush3.bf16.msra.mxu1 %v5668_v60  ;;  %4911 = vmatpush3.bf16.msra.mxu0 %v5669_v61  ;;  %v5692_v60 = vld [vmem:[%s6463_s21 + $0x118] sm:$0xff]  }
 0x88a   : > { %4890 = vmatprep.subr.bf16.mxu1 %v5670_v62  ;;  %4912 = vmatprep.subr.bf16.mxu0 %v5671_v1  ;;  %v5693_v61 = vld [vmem:[%s6463_s21 + $0x198] sm:$0xff]   ;;  %v5694_v62 = vld [vmem:[%s6463_s21 + $0x150] sm:$0xff]  }
 0x88b   : > { %v5695_v1 = vld [vmem:[%s6463_s21 + $0x1d0] sm:$0xff]  }
 0x88d   : > { %4891 = vmatpush3.bf16.msra.mxu1 %v5672_v2  ;;  %4913 = vmatpush3.bf16.msra.mxu0 %v5673_v4  ;;  %v1669_v2 = vsub.s32 5, %v6511_v63  ;;  %v1677_v4 = vsub.s32 7, %v6511_v63 }
 0x88e   : > { %4920 = vmatprep.subr.bf16.mxu1 %v5674_v5  ;;  %4942 = vmatprep.subr.bf16.mxu0 %v5675_v6  ;;  %v1665_v5 = vsub.s32 4, %v6511_v63  ;;  %v1673_v6 = vsub.s32 6, %v6511_v63 }
 0x8d0   : > { %v2401_v9 = vpop.f32.mrf.mxu1  ;;  %v2444_v10 = vpop.f32.mrf.mxu0 }
 0x8d1   : > { %v2402_v32 = vadd.f32 %v2401_v9, %v1650_v15  ;;  %v2445_v34 = vadd.f32 %v2444_v10, %v1658_v16  ;;  %v5696_v9 = vld [vmem:[%s6463_s21 + $0x110] sm:$0xff]  }
 0x8d2   : > { %v2403_v35 = vpop.f32.mrf.mxu1  ;;  %v2446_v18 = vpop.f32.mrf.mxu0  ;;  %v5697_v10 = vld [vmem:[%s6463_s21 + $0x190] sm:$0xff]  }
 0x8d3   : > { %v2404_v24 = vadd.f32 %v2403_v35, %v1654_v12  ;;  %v2447_v26 = vadd.f32 %v2446_v18, %v1662_v13  ;;  %v2711_v33 = vmax.f32 %v2402_v32, 0.0  ;;  %v2713_v36 = vmax.f32 %v2445_v34, 0.0 }
 0x8d4   : > { %v2405_v20 = vpop.f32.mrf.mxu1  ;;  %v2448_v22 = vpop.f32.mrf.mxu0  ;;  %v1670_v35 = vrot.slane %v6849_v8, %v1669_v2  ;;  %v1678_v18 = vrot.slane %v6849_v8, %v1677_v4 }
 0x8d5   : > { %v2406_v28 = vadd.f32 %v2405_v20, %v1650_v15  ;;  %v2449_v30 = vadd.f32 %v2448_v22, %v1658_v16  ;;  %v2712_v25 = vmax.f32 %v2404_v24, 0.0  ;;  %v2714_v27 = vmax.f32 %v2447_v26, 0.0  ;;  %v5698_v15 = vld [vmem:[%s6463_s21 + $0x148] sm:$0xff]  }
 0x8d6   : > { %v2407_v11 = vpop.f32.mrf.mxu1  ;;  %v2450_v14 = vpop.f32.mrf.mxu0  ;;  %v5699_v16 = vld [vmem:[%s6463_s21 + $0x1c8] sm:$0xff]   ;;  %v1666_v20 = vrot.slane %v6849_v8, %v1665_v5  ;;  %v1674_v22 = vrot.slane %v6849_v8, %v1673_v6 }
 0x8d7   : > { %v2408_v17 = vadd.f32 %v2407_v11, %v1654_v12  ;;  %v2451_v19 = vadd.f32 %v2450_v14, %v1662_v13  ;;  %v2727_v21 = vmax.f32 %v2406_v28, 0.0  ;;  %v2729_v23 = vmax.f32 %v2449_v30, 0.0  ;;  %v5700_v28 = vld [vmem:[%s6463_s21 + $0x108] sm:$0xff]   ;;  %v5702_v11 = vld [vmem:[%s6463_s21 + $0x140] sm:$0xff]  }
 0x8d8   : > { %v5701_v30 = vld [vmem:[%s6463_s21 + $0x188] sm:$0xff]   ;;  %v5703_v14 = vld [vmem:[%s6463_s21 + $0x1c0] sm:$0xff]  }
 0x8d9   : > { %v2728_v29 = vmax.f32 %v2408_v17, 0.0  ;;  %v2730_v31 = vmax.f32 %v2451_v19, 0.0  ;;  %v2743_v41 = vpack.c.bf16 %v2727_v21, %v2711_v33  ;;  %v2745_v42 = vpack.c.bf16 %v2729_v23, %v2713_v36  ;;  %v5704_v36 = vld [vmem:[%s6463_s21 + $0x100] sm:$0xff]  }
 0x8db   : > { %v2744_v37 = vpack.c.bf16 %v2728_v29, %v2712_v25  ;;  %v2746_v38 = vpack.c.bf16 %v2730_v31, %v2714_v27 }
 0x8dd   : > { %3822 = vmatprep.mubr.bf16.mxu1 %v2744_v37  ;;  %3863 = vmatprep.mubr.bf16.mxu0 %v2746_v38  ;;  %v5705_v37 = vld [vmem:[%s6463_s21 + $0x180] sm:$0xff]  }
 0x8de   : > { %3823 = vmatmul.mubr.bf16.vlgmr.msra.gmra.mxu1 %v2743_v41  ;;  %3864 = vmatmul.mubr.bf16.vlgmr.msra.gmra.mxu0 %v2745_v42  ;;  %v5707_v41 = vld [vmem:[%s6463_s21 + $0x2f8] sm:$0xff]  }
 0x8df   : > { %4921 = vmatpush3.bf16.msra.mxu1 %v5676_v39  ;;  %4943 = vmatpush3.bf16.msra.mxu0 %v5677_v40  ;;  %v5706_v40 = vld [vmem:[%s6463_s21 + $0x278] sm:$0xff]  }
 0x8e0   : > { %4922 = vmatprep.subr.bf16.mxu1 %v5678_v55  ;;  %4944 = vmatprep.subr.bf16.mxu0 %v5679_v54 }
 0x8e3   : > { %4923 = vmatpush3.bf16.msra.mxu1 %v5680_v43  ;;  %4945 = vmatpush3.bf16.msra.mxu0 %v5681_v44 }
 0x8e4   : > { %4924 = vmatprep.subr.bf16.mxu1 %v5682_v45  ;;  %4946 = vmatprep.subr.bf16.mxu0 %v5683_v47 }
 0x8e7   : > { %4925 = vmatpush3.bf16.msra.mxu1 %v5684_v48  ;;  %4947 = vmatpush3.bf16.msra.mxu0 %v5685_v49  ;;  %v5708_v49 = vld [vmem:[%s6463_s21 + $0x238] sm:$0xff]  }
 0x8e8   : > { %4926 = vmatprep.subr.bf16.mxu1 %v5686_v52  ;;  %4948 = vmatprep.subr.bf16.mxu0 %v5687_v53  ;;  %v5709_v52 = vld [vmem:[%s6463_s21 + $0x2b8] sm:$0xff]  }
 0x8eb   : > { %4927 = vmatpush3.bf16.msra.mxu1 %v5688_v56  ;;  %4949 = vmatpush3.bf16.msra.mxu0 %v5689_v57  ;;  %v5710_v57 = vld [vmem:[%s6463_s21 + $0x270] sm:$0xff]  }
 0x8ec   : > { %4928 = vmatprep.subr.bf16.mxu1 %v5690_v58  ;;  %4950 = vmatprep.subr.bf16.mxu0 %v5691_v59  ;;  %v5711_v58 = vld [vmem:[%s6463_s21 + $0x2f0] sm:$0xff]  }
 0x8ed   : > { %v5712_v59 = vld [vmem:[%s6463_s21 + $0x230] sm:$0xff]  }
 0x8ef   : > { %4929 = vmatpush3.bf16.msra.mxu1 %v5692_v60  ;;  %4951 = vmatpush3.bf16.msra.mxu0 %v5693_v61  ;;  %v5713_v60 = vld [vmem:[%s6463_s21 + $0x2b0] sm:$0xff]   ;;  %v5714_v61 = vld [vmem:[%s6463_s21 + $0x268] sm:$0xff]  }
 0x8f0   : > { %v2487_v12 = vpop.f32.mrf.mxu1  ;;  %v2530_v13 = vpop.f32.mrf.mxu0  ;;  %4930 = vmatprep.subr.bf16.mxu1 %v5694_v62  ;;  %4952 = vmatprep.subr.bf16.mxu0 %v5695_v1  ;;  %v5715_v62 = vld [vmem:[%s6463_s21 + $0x2e8] sm:$0xff]  }
 0x8f1   : > { %v2488_v8 = vadd.f32 %v2487_v12, %v1666_v20  ;;  %v2531_v25 = vadd.f32 %v2530_v13, %v1674_v22  ;;  %v5716_v1 = vld [vmem:[%s6463_s21 + $0x228] sm:$0xff]   ;;  %v5719_v12 = vld [vmem:[%s6463_s21 + $0x2e0] sm:$0xff]  }
 0x8f2   : > { %v2489_v24 = vpop.f32.mrf.mxu1  ;;  %v2532_v26 = vpop.f32.mrf.mxu0  ;;  %v5720_v13 = vld [vmem:[%s6463_s21 + $0x220] sm:$0xff]  }
 0x8f3   : > { %4931 = vmatpush3.bf16.msra.mxu1 %v5696_v9  ;;  %4953 = vmatpush3.bf16.msra.mxu0 %v5697_v10  ;;  %v2490_v17 = vadd.f32 %v2489_v24, %v1670_v35  ;;  %v2533_v19 = vadd.f32 %v2532_v26, %v1678_v18  ;;  %v2715_v44 = vmax.f32 %v2488_v8, 0.0  ;;  %v2717_v45 = vmax.f32 %v2531_v25, 0.0  ;;  %v5717_v9 = vld [vmem:[%s6463_s21 + $0x2a8] sm:$0xff]   ;;  %v5718_v10 = vld [vmem:[%s6463_s21 + $0x260] sm:$0xff]   ;;  %v5727_v24 = vld [vmem:[%s6463_s21 + $0x2d0] sm:$0xff]  }
 0x8f4   : > { %v2491_v32 = vpop.f32.mrf.mxu1  ;;  %v2534_v34 = vpop.f32.mrf.mxu0  ;;  %4932 = vmatprep.subr.bf16.mxu1 %v5698_v15  ;;  %4954 = vmatprep.subr.bf16.mxu0 %v5699_v16  ;;  %v5721_v15 = vld [vmem:[%s6463_s21 + $0x2a0] sm:$0xff]   ;;  %v5722_v16 = vld [vmem:[%s6463_s21 + $0x258] sm:$0xff]  }
 0x8f5   : > { %v2492_v21 = vadd.f32 %v2491_v32, %v1666_v20  ;;  %v2535_v23 = vadd.f32 %v2534_v34, %v1674_v22  ;;  %v2716_v42 = vmax.f32 %v2490_v17, 0.0  ;;  %v2718_v55 = vmax.f32 %v2533_v19, 0.0  ;;  %v5725_v20 = vld [vmem:[%s6463_s21 + $0x298] sm:$0xff]   ;;  %v5726_v22 = vld [vmem:[%s6463_s21 + $0x250] sm:$0xff]  }
 0x8f6   : > { %v2493_v27 = vpop.f32.mrf.mxu1  ;;  %v2536_v29 = vpop.f32.mrf.mxu0  ;;  %v6929_v26 = vld [vmem:[%s6465_s25 + $0xe] sm:$0xff] }
 0x8f7   : > { %v2494_v31 = vadd.f32 %v2493_v27, %v1670_v35  ;;  %v2537_v33 = vadd.f32 %v2536_v29, %v1678_v18  ;;  %4933 = vmatpush3.bf16.msra.mxu1 %v5700_v28  ;;  %4955 = vmatpush3.bf16.msra.mxu0 %v5701_v30  ;;  %v2731_v38 = vmax.f32 %v2492_v21, 0.0  ;;  %v2733_v39 = vmax.f32 %v2535_v23, 0.0  ;;  %v5723_v35 = vld [vmem:[%s6463_s21 + $0x2d8] sm:$0xff]   ;;  %v5728_v28 = vld [vmem:[%s6463_s21 + $0x210] sm:$0xff]   ;;  %v5732_v27 = vld [vmem:[%s6463_s21 + $0x208] sm:$0xff]  }
 0x8f8   : > { %4934 = vmatprep.subr.bf16.mxu1 %v5702_v11  ;;  %4956 = vmatprep.subr.bf16.mxu0 %v5703_v14  ;;  %v5724_v18 = vld [vmem:[%s6463_s21 + $0x218] sm:$0xff]   ;;  %v5729_v30 = vld [vmem:[%s6463_s21 + $0x290] sm:$0xff]   ;;  %v5730_v11 = vld [vmem:[%s6463_s21 + $0x248] sm:$0xff]   ;;  %v1686_v17 = vrot.slane %v6929_v26, %v6522_v3  ;;  %v1694_v19 = vrot.slane %v6929_v26, %v1661_v7  ;;  %v1682_v21 = vrot.slane %v6929_v26, %v6514_v0 }
 0x8f9   : > { %v2732_v54 = vmax.f32 %v2494_v31, 0.0  ;;  %v2734_v43 = vmax.f32 %v2537_v33, 0.0  ;;  %v2747_v53 = vpack.c.bf16 %v2731_v38, %v2715_v44  ;;  %v2749_v56 = vpack.c.bf16 %v2733_v39, %v2717_v45  ;;  %v5731_v14 = vld [vmem:[%s6463_s21 + $0x2c8] sm:$0xff]   ;;  %v5734_v3 = vld [vmem:[%s6463_s21 + $0x240] sm:$0xff]  }
 0x8fa   : > { %v1690_v23 = vrot.slane %v6929_v26, %v6581_v46  ;;  %v5733_v29 = vld [vmem:[%s6463_s21 + $0x288] sm:$0xff]   ;;  %v5735_v7 = vld [vmem:[%s6463_s21 + $0x2c0] sm:$0xff]  }
 0x8fb   : > { %v2748_v47 = vpack.c.bf16 %v2732_v54, %v2716_v42  ;;  %v2750_v48 = vpack.c.bf16 %v2734_v43, %v2718_v55  ;;  %4935 = vmatpush3.bf16.msra.mxu1 %v5704_v36  ;;  %4957 = vmatpush3.bf16.msra.mxu0 %v5705_v37  ;;  %v5736_v54 = vld [vmem:[%s6463_s21 + $0x200] sm:$0xff]  }
 0x8fc   : > { %4964 = vmatprep.subr.bf16.mxu1 %v5706_v40  ;;  %4986 = vmatprep.subr.bf16.mxu0 %v5707_v41  ;;  %v5737_v43 = vld [vmem:[%s6463_s21 + $0x280] sm:$0xff]  }
 0x8fd   : > { %3904 = vmatprep.mubr.bf16.mxu1 %v2748_v47  ;;  %3945 = vmatprep.mubr.bf16.mxu0 %v2750_v48  ;;  %v5738_v47 = vld [vmem:[%s6463_s21 + $0x378] sm:$0xff]  }
 0x8fe   : > { %3905 = vmatmul.mubr.bf16.vlgmr.msra.gmra.mxu1 %v2747_v53  ;;  %3946 = vmatmul.mubr.bf16.vlgmr.msra.gmra.mxu0 %v2749_v56  ;;  %v5739_v48 = vld [vmem:[%s6463_s21 + $0x3f8] sm:$0xff]  }
 0x8ff   : > { %4965 = vmatpush3.bf16.msra.mxu1 %v5708_v49  ;;  %4987 = vmatpush3.bf16.msra.mxu0 %v5709_v52 }
 0x900   : > { %4966 = vmatprep.subr.bf16.mxu1 %v5710_v57  ;;  %4988 = vmatprep.subr.bf16.mxu0 %v5711_v58 }
 0x903   : > { %4967 = vmatpush3.bf16.msra.mxu1 %v5712_v59  ;;  %4989 = vmatpush3.bf16.msra.mxu0 %v5713_v60 }
 0x904   : > { %4968 = vmatprep.subr.bf16.mxu1 %v5714_v61  ;;  %4990 = vmatprep.subr.bf16.mxu0 %v5715_v62  ;;  %v5740_v61 = vld [vmem:[%s6463_s21 + $0x338] sm:$0xff]  }
 0x905   : > { %v5741_v62 = vld [vmem:[%s6463_s21 + $0x3b8] sm:$0xff]  }
 0x907   : > { %4969 = vmatpush3.bf16.msra.mxu1 %v5716_v1  ;;  %4991 = vmatpush3.bf16.msra.mxu0 %v5717_v9 }
 0x908   : > { %4970 = vmatprep.subr.bf16.mxu1 %v5718_v10  ;;  %4992 = vmatprep.subr.bf16.mxu0 %v5719_v12  ;;  %v5742_v10 = vld [vmem:[%s6463_s21 + $0x370] sm:$0xff]  }
 0x909   : > { %v5743_v12 = vld [vmem:[%s6463_s21 + $0x3f0] sm:$0xff]  }
 0x90b   : > { %4971 = vmatpush3.bf16.msra.mxu1 %v5720_v13  ;;  %4993 = vmatpush3.bf16.msra.mxu0 %v5721_v15  ;;  %v5744_v13 = vld [vmem:[%s6463_s21 + $0x330] sm:$0xff]  }
 0x90c   : > { %4972 = vmatprep.subr.bf16.mxu1 %v5722_v16  ;;  %4994 = vmatprep.subr.bf16.mxu0 %v5723_v35  ;;  %v5745_v15 = vld [vmem:[%s6463_s21 + $0x3b0] sm:$0xff]   ;;  %v5746_v16 = vld [vmem:[%s6463_s21 + $0x368] sm:$0xff]  }
 0x90d   : > { %v5747_v35 = vld [vmem:[%s6463_s21 + $0x3e8] sm:$0xff]  }
 0x90f   : > { %4973 = vmatpush3.bf16.msra.mxu1 %v5724_v18  ;;  %4995 = vmatpush3.bf16.msra.mxu0 %v5725_v20  ;;  %v5748_v18 = vld [vmem:[%s6463_s21 + $0x328] sm:$0xff]  }
 0x910   : > { %v2573_v32 = vpop.f32.mrf.mxu1  ;;  %v2616_v34 = vpop.f32.mrf.mxu0  ;;  %4974 = vmatprep.subr.bf16.mxu1 %v5726_v22  ;;  %4996 = vmatprep.subr.bf16.mxu0 %v5727_v24  ;;  %v5749_v20 = vld [vmem:[%s6463_s21 + $0x3a8] sm:$0xff]   ;;  %v5750_v22 = vld [vmem:[%s6463_s21 + $0x360] sm:$0xff]  }
 0x911   : > { %v2574_v46 = vadd.f32 %v2573_v32, %v1682_v21  ;;  %v2617_v39 = vadd.f32 %v2616_v34, %v1690_v23  ;;  %v5751_v24 = vld [vmem:[%s6463_s21 + $0x3e0] sm:$0xff]   ;;  %v5754_v32 = vld [vmem:[%s6463_s21 + $0x358] sm:$0xff]  }
 0x912   : > { %v2575_v8 = vpop.f32.mrf.mxu1  ;;  %v2618_v25 = vpop.f32.mrf.mxu0  ;;  %v5755_v34 = vld [vmem:[%s6463_s21 + $0x3d8] sm:$0xff]  }
 0x913   : > { %4975 = vmatpush3.bf16.msra.mxu1 %v5728_v28  ;;  %4997 = vmatpush3.bf16.msra.mxu0 %v5729_v30  ;;  %v2576_v36 = vadd.f32 %v2575_v8, %v1686_v17  ;;  %v2619_v37 = vadd.f32 %v2618_v25, %v1694_v19  ;;  %v2719_v57 = vmax.f32 %v2574_v46, 0.0  ;;  %v2721_v58 = vmax.f32 %v2617_v39, 0.0  ;;  %v5752_v28 = vld [vmem:[%s6463_s21 + $0x320] sm:$0xff]  }
 0x914   : > { %v2577_v31 = vpop.f32.mrf.mxu1  ;;  %v2620_v33 = vpop.f32.mrf.mxu0  ;;  %4976 = vmatprep.subr.bf16.mxu1 %v5730_v11  ;;  %4998 = vmatprep.subr.bf16.mxu0 %v5731_v14  ;;  %v5753_v30 = vld [vmem:[%s6463_s21 + $0x3a0] sm:$0xff]   ;;  %v5756_v11 = vld [vmem:[%s6463_s21 + $0x318] sm:$0xff]  }
 0x915   : > { %v2578_v0 = vadd.f32 %v2577_v31, %v1682_v21  ;;  %v2621_v38 = vadd.f32 %v2620_v33, %v1690_v23  ;;  %v2720_v49 = vmax.f32 %v2576_v36, 0.0  ;;  %v2722_v52 = vmax.f32 %v2619_v37, 0.0  ;;  %v5757_v14 = vld [vmem:[%s6463_s21 + $0x398] sm:$0xff]   ;;  %v5760_v21 = vld [vmem:[%s6463_s21 + $0x310] sm:$0xff]   ;;  %v5767_v39 = vld [vmem:[%s6463_s21 + $0x3c0] sm:$0xff]  }
 0x916   : > { %v2579_v40 = vpop.f32.mrf.mxu1  ;;  %v2622_v41 = vpop.f32.mrf.mxu0  ;;  %v5761_v23 = vld [vmem:[%s6463_s21 + $0x390] sm:$0xff]   ;;  %v1702_v31 = vrot.slane %v6929_v26, %v1669_v2  ;;  %v1710_v33 = vrot.slane %v6929_v26, %v1677_v4  ;;  %v5766_v4 = vld [vmem:[%s6463_s21 + $0x340] sm:$0xff]  }
 0x917   : > { %v2580_v42 = vadd.f32 %v2579_v40, %v1686_v17  ;;  %v2623_v55 = vadd.f32 %v2622_v41, %v1694_v19  ;;  %4977 = vmatpush3.bf16.msra.mxu1 %v5732_v27  ;;  %4999 = vmatpush3.bf16.msra.mxu0 %v5733_v29  ;;  %v2735_v44 = vmax.f32 %v2578_v0, 0.0  ;;  %v2737_v45 = vmax.f32 %v2621_v38, 0.0  ;;  %v5758_v17 = vld [vmem:[%s6463_s21 + $0x350] sm:$0xff]   ;;  %v5762_v27 = vld [vmem:[%s6463_s21 + $0x348] sm:$0xff]  }
 0x918   : > { %4978 = vmatprep.subr.bf16.mxu1 %v5734_v3  ;;  %5000 = vmatprep.subr.bf16.mxu0 %v5735_v7  ;;  %v5759_v19 = vld [vmem:[%s6463_s21 + $0x3d0] sm:$0xff]   ;;  %v5763_v29 = vld [vmem:[%s6463_s21 + $0x3c8] sm:$0xff]   ;;  %v1698_v3 = vrot.slane %v6929_v26, %v1665_v5  ;;  %v1706_v7 = vrot.slane %v6929_v26, %v1673_v6 }
 0x919   : > { %v2736_v53 = vmax.f32 %v2580_v42, 0.0  ;;  %v2738_v56 = vmax.f32 %v2623_v55, 0.0  ;;  %v2751_v1 = vpack.c.bf16 %v2735_v44, %v2719_v57  ;;  %v2753_v9 = vpack.c.bf16 %v2737_v45, %v2721_v58  ;;  %v5764_v0 = vld [vmem:[%s6463_s21 + $0x308] sm:$0xff]   ;;  %v5768_v44 = vld [vmem:[%s6463_s21 + $0x300] sm:$0xff]  }
 0x91a   : > { %v5765_v38 = vld [vmem:[%s6463_s21 + $0x388] sm:$0xff]   ;;  %v5769_v45 = vld [vmem:[%s6463_s21 + $0x380] sm:$0xff]  }
 0x91b   : > { %v2752_v59 = vpack.c.bf16 %v2736_v53, %v2720_v49  ;;  %v2754_v60 = vpack.c.bf16 %v2738_v56, %v2722_v52  ;;  %4979 = vmatpush3.bf16.msra.mxu1 %v5736_v54  ;;  %5001 = vmatpush3.bf16.msra.mxu0 %v5737_v43 }
 0x91c   : > { %5008 = vmatprep.subr.bf16.mxu1 %v5738_v47  ;;  %5030 = vmatprep.subr.bf16.mxu0 %v5739_v48 }
 0x91d   : > { %3986 = vmatprep.mubr.bf16.mxu1 %v2752_v59  ;;  %4027 = vmatprep.mubr.bf16.mxu0 %v2754_v60 }
 0x91e   : > { %3987 = vmatmul.mubr.bf16.vlgmr.msra.gmra.mxu1 %v2751_v1  ;;  %4028 = vmatmul.mubr.bf16.vlgmr.msra.gmra.mxu0 %v2753_v9 }
 0x91f   : > { %5009 = vmatpush3.bf16.msra.mxu1 %v5740_v61  ;;  %5031 = vmatpush3.bf16.msra.mxu0 %v5741_v62 }
 0x920   : > { %5010 = vmatprep.subr.bf16.mxu1 %v5742_v10  ;;  %5032 = vmatprep.subr.bf16.mxu0 %v5743_v12 }
 0x923   : > { %5011 = vmatpush3.bf16.msra.mxu1 %v5744_v13  ;;  %5033 = vmatpush3.bf16.msra.mxu0 %v5745_v15 }
 0x924   : > { %5012 = vmatprep.subr.bf16.mxu1 %v5746_v16  ;;  %5034 = vmatprep.subr.bf16.mxu0 %v5747_v35 }
 0x927   : > { %5013 = vmatpush3.bf16.msra.mxu1 %v5748_v18  ;;  %5035 = vmatpush3.bf16.msra.mxu0 %v5749_v20 }
 0x928   : > { %5014 = vmatprep.subr.bf16.mxu1 %v5750_v22  ;;  %5036 = vmatprep.subr.bf16.mxu0 %v5751_v24 }
 0x92b   : > { %5015 = vmatpush3.bf16.msra.mxu1 %v5752_v28  ;;  %5037 = vmatpush3.bf16.msra.mxu0 %v5753_v30 }
 0x92c   : > { %5016 = vmatprep.subr.bf16.mxu1 %v5754_v32  ;;  %5038 = vmatprep.subr.bf16.mxu0 %v5755_v34 }
 0x92f   : > { %5017 = vmatpush3.bf16.msra.mxu1 %v5756_v11  ;;  %5039 = vmatpush3.bf16.msra.mxu0 %v5757_v14  ;;  %v4646_v11 = vld [vmem:[%s6465_s25 + $0x16] ss:$0 sm:$0xff] }
 0x930   : > { %v2659_v8 = vpop.f32.mrf.mxu1  ;;  %v2702_v25 = vpop.f32.mrf.mxu0  ;;  %5018 = vmatprep.subr.bf16.mxu1 %v5758_v17  ;;  %5040 = vmatprep.subr.bf16.mxu0 %v5759_v19 }
 0x931   : > { %v2660_v42 = vadd.f32 %v2659_v8, %v1698_v3  ;;  %v2703_v6 = vadd.f32 %v2702_v25, %v1706_v7 }
 0x932   : > { %v2661_v36 = vpop.f32.mrf.mxu1  ;;  %v2704_v37 = vpop.f32.mrf.mxu0 }
 0x933   : > { %5019 = vmatpush3.bf16.msra.mxu1 %v5760_v21  ;;  %5041 = vmatpush3.bf16.msra.mxu0 %v5761_v23  ;;  %v2662_v40 = vadd.f32 %v2661_v36, %v1702_v31  ;;  %v2705_v5 = vadd.f32 %v2704_v37, %v1710_v33  ;;  %v2723_v57 = vmax.f32 %v2660_v42, 0.0  ;;  %v2725_v58 = vmax.f32 %v2703_v6, 0.0 }
 0x934   : > { %v2663_v46 = vpop.f32.mrf.mxu1  ;;  %v2706_v2 = vpop.f32.mrf.mxu0  ;;  %5020 = vmatprep.subr.bf16.mxu1 %v5762_v27  ;;  %5042 = vmatprep.subr.bf16.mxu0 %v5763_v29 }
 0x935   : > { %v2664_v41 = vadd.f32 %v2663_v46, %v1698_v3  ;;  %v2707_v63 = vadd.f32 %v2706_v2, %v1706_v7  ;;  %v2724_v49 = vmax.f32 %v2662_v40, 0.0  ;;  %v2726_v52 = vmax.f32 %v2705_v5, 0.0 }
 0x936   : > { %v2665_v26 = vpop.f32.mrf.mxu1  ;;  %v2708_v55 = vpop.f32.mrf.mxu0 }
 0x937   : > { %v2666_v54 = vadd.f32 %v2665_v26, %v1702_v31  ;;  %v2709_v43 = vadd.f32 %v2708_v55, %v1710_v33  ;;  %5021 = vmatpush3.bf16.msra.mxu1 %v5764_v0  ;;  %5043 = vmatpush3.bf16.msra.mxu0 %v5765_v38  ;;  %v2739_v47 = vmax.f32 %v2664_v41, 0.0  ;;  %v2741_v48 = vmax.f32 %v2707_v63, 0.0 }
 0x938   : > { %5022 = vmatprep.subr.bf16.mxu1 %v5766_v4  ;;  %5044 = vmatprep.subr.bf16.mxu0 %v5767_v39 }
 0x939   : > { %v2740_v53 = vmax.f32 %v2666_v54, 0.0  ;;  %v2742_v56 = vmax.f32 %v2709_v43, 0.0  ;;  %v2755_v61 = vpack.c.bf16 %v2739_v47, %v2723_v57  ;;  %v2757_v62 = vpack.c.bf16 %v2741_v48, %v2725_v58 }
 0x93b   : > { %v2756_v59 = vpack.c.bf16 %v2740_v53, %v2724_v49  ;;  %v2758_v60 = vpack.c.bf16 %v2742_v56, %v2726_v52  ;;  %5023 = vmatpush3.bf16.msra.mxu1 %v5768_v44  ;;  %5045 = vmatpush3.bf16.msra.mxu0 %v5769_v45 }
 0x93d   : > { %4068 = vmatprep.mubr.bf16.mxu1 %v2756_v59  ;;  %4109 = vmatprep.mubr.bf16.mxu0 %v2758_v60 }
 0x93e   : > { %4069 = vmatmul.mubr.bf16.vlgmr.msra.gmra.mxu1 %v2755_v61  ;;  %4110 = vmatmul.mubr.bf16.vlgmr.msra.gmra.mxu0 %v2757_v62 }
 0x99e   : > { %v4892_v1 = vpop.f32.mrf.mxu1  ;;  %v4914_v9 = vpop.f32.mrf.mxu0 }
 0x9a0   : > { %v4893_v10 = vpop.f32.mrf.mxu1  ;;  %v4915_v12 = vpop.f32.mrf.mxu0 }
 0x9a1   : > { %v4894_v34 = vadd.f32 %v4893_v10, %v4892_v1  ;;  %v4916_v25 = vadd.f32 %v4915_v12, %v4914_v9 }
 0x9a2   : > { %v4895_v13 = vpop.f32.mrf.mxu1  ;;  %v4917_v15 = vpop.f32.mrf.mxu0 }
 0x9a3   : > { %v3825_v21 = vadd.f32 %v4894_v34, %v4646_v11 }
 0x9a4   : > { %v4896_v16 = vpop.f32.mrf.mxu1  ;;  %v4918_v35 = vpop.f32.mrf.mxu0 }
 0x9a5   : > { %v4897_v23 = vadd.f32 %v4896_v16, %v4895_v13  ;;  %v3866_v31 = vadd.f32 %v4916_v25, %v3825_v21  ;;  %v4919_v7 = vadd.f32 %v4918_v35, %v4917_v15  ;;  %v4776_v21 = vld [vmem:[%s6465_s25 + $0x18] ss:$0 sm:$0xff] }
 0x9a7   : > { %v3828_v33 = vadd.f32 %v4897_v23, %v4646_v11 }
 0x9a9   : > { %v3869_v38 = vadd.f32 %v4919_v7, %v3828_v33 }
 0x9be   : > { %v4936_v18 = vpop.f32.mrf.mxu1  ;;  %v4958_v20 = vpop.f32.mrf.mxu0 }
 0x9c0   : > { %v4937_v22 = vpop.f32.mrf.mxu1  ;;  %v4959_v24 = vpop.f32.mrf.mxu0 }
 0x9c1   : > { %v4938_v27 = vadd.f32 %v4937_v22, %v4936_v18  ;;  %v4960_v46 = vadd.f32 %v4959_v24, %v4958_v20 }
 0x9c2   : > { %v4939_v28 = vpop.f32.mrf.mxu1  ;;  %v4961_v30 = vpop.f32.mrf.mxu0 }
 0x9c3   : > { %v3907_v36 = vadd.f32 %v4938_v27, %v3866_v31 }
 0x9c4   : > { %v4940_v32 = vpop.f32.mrf.mxu1  ;;  %v4962_v14 = vpop.f32.mrf.mxu0 }
 0x9c5   : > { %v4941_v37 = vadd.f32 %v4940_v32, %v4939_v28  ;;  %v3948_v39 = vadd.f32 %v4960_v46, %v3907_v36  ;;  %v4963_v41 = vadd.f32 %v4962_v14, %v4961_v30 }
 0x9c7   : > { %v3910_v40 = vadd.f32 %v4941_v37, %v3869_v38 }
 0x9c9   : > { %v3951_v55 = vadd.f32 %v4963_v41, %v3910_v40 }
 0x9de   : > { %v4980_v17 = vpop.f32.mrf.mxu1  ;;  %v5002_v19 = vpop.f32.mrf.mxu0 }
 0x9e0   : > { %v4981_v8 = vpop.f32.mrf.mxu1  ;;  %v5003_v29 = vpop.f32.mrf.mxu0 }
 0x9e1   : > { %v4982_v2 = vadd.f32 %v4981_v8, %v4980_v17  ;;  %v5004_v54 = vadd.f32 %v5003_v29, %v5002_v19  ;;  %v4775_v17 = vld [vmem:[%s6465_s25 + $0x17] ss:$0 sm:$0xff] }
 0x9e2   : > { %v4983_v3 = vpop.f32.mrf.mxu1  ;;  %v5005_v0 = vpop.f32.mrf.mxu0 }
 0x9e3   : > { %v3989_v63 = vadd.f32 %v4982_v2, %v3948_v39 }
 0x9e4   : > { %v4984_v4 = vpop.f32.mrf.mxu1  ;;  %v5006_v5 = vpop.f32.mrf.mxu0 }
 0x9e5   : > { %v4985_v42 = vadd.f32 %v4984_v4, %v4983_v3  ;;  %v4030_v45 = vadd.f32 %v5004_v54, %v3989_v63  ;;  %v5007_v53 = vadd.f32 %v5006_v5, %v5005_v0 }
 0x9e7   : > { %v3992_v47 = vadd.f32 %v4985_v42, %v3951_v55 }
 0x9e9   : > { %v4033_v60 = vadd.f32 %v5007_v53, %v3992_v47 }
 0x9fe   : > { %v5024_v6 = vpop.f32.mrf.mxu1  ;;  %v5046_v26 = vpop.f32.mrf.mxu0 }
 0xa00   : > { %v5025_v43 = vpop.f32.mrf.mxu1  ;;  %v5047_v44 = vpop.f32.mrf.mxu0 }
 0xa01   : > { %v5026_v48 = vadd.f32 %v5025_v43, %v5024_v6  ;;  %v5048_v57 = vadd.f32 %v5047_v44, %v5046_v26 }
 0xa02   : > { %v5027_v49 = vpop.f32.mrf.mxu1  ;;  %v5049_v52 = vpop.f32.mrf.mxu0 }
 0xa03   : > { %v4071_v56 = vadd.f32 %v5026_v48, %v4030_v45 }
 0xa04   : > { %v5028_v58 = vpop.f32.mrf.mxu1  ;;  %v5050_v59 = vpop.f32.mrf.mxu0 }
 0xa05   : > { %v4112_v61 = vadd.f32 %v5048_v57, %v4071_v56  ;;  %v5029_v62 = vadd.f32 %v5028_v58, %v5027_v49  ;;  %v5051_v9 = vadd.f32 %v5050_v59, %v5049_v52 }
 0xa07   : > { %v4074_v1 = vadd.f32 %v5029_v62, %v4033_v60  ;;  %v4118_v10 = vadd.f32 %v4112_v61, %v6697_v50 }
 0xa09   : > { %v4115_v12 = vadd.f32 %v5051_v9, %v4074_v1  ;;  %4122 = vadd.xlane.f32.xlu0 %v4118_v10 }
 0xa0b   : > { %v4119_v13 = vadd.f32 %v4115_v12, %v6699_v51 }
 0xa0d   : > { %4124 = vadd.xlane.f32.xlu1 %v4119_v13 }
 0xa92   : > { %v4123_v15 = vpop.xlane.xlu0 %4122 }
 0xa93   : > { %v4126_v16 = vmul.f32 0.0078125, %v4123_v15 }
 0xa95   : > { %v4128_v35 = vsub.f32 %v4118_v10, %v4126_v16 }
 0xa96   : > { %v4125_v18 = vpop.xlane.xlu1 %4124 }
 0xa97   : > { %v4127_v20 = vmul.f32 0.0078125, %v4125_v18  ;;  %v4130_v22 = vmul.f32 %v4128_v35, %v4128_v35 }
 0xa99   : > { %v4129_v24 = vsub.f32 %v4119_v13, %v4127_v20  ;;  %4132 = vadd.xlane.f32.xlu0 %v4130_v22 }
 0xa9b   : > { %v4131_v28 = vmul.f32 %v4129_v24, %v4129_v24 }
 0xa9d   : > { %4134 = vadd.xlane.f32.xlu1 %v4131_v28 }
 0xb22   : > { %v4133_v30 = vpop.xlane.xlu0 %4132 }
 0xb23   : > { %v4136_v32 = vmul.f32 0.0078125, %v4133_v30 }
 0xb25   : > { %v4138_v50 = vadd.f32 1e-05, %v4136_v32 }
 0xb26   : > { %v4135_v34 = vpop.xlane.xlu1 %4134 }
 0xb27   : > { %5782 = vrsqrt.f32 %v4138_v50  ;;  %v4137_v11 = vmul.f32 0.0078125, %v4135_v34 }
 0xb29   : > { %v4139_v51 = vadd.f32 1e-05, %v4137_v11 }
 0xb2b   : > { %5784 = vrsqrt.f32 %v4139_v51 }
 0xb34   : > { %v5783_v14 = vpop.eup %5782 }
 0xb35   : > { %v4142_v19 = vmul.f32 %v5783_v14, %v4128_v35 }
 0xb37   : > { %v4150_v23 = vmul.f32 %v4775_v17, %v4142_v19 }
 0xb38   : > { %v5785_v8 = vpop.eup %5784 }
 0xb39   : > { %v4158_v25 = vadd.f32 %v4776_v21, %v4150_v23  ;;  %v4143_v27 = vmul.f32 %v5785_v8, %v4129_v24 }
 0xb3b   : > { %4160 = vst [vmem:[#allocation2] sm:$0xff] %v4158_v25  ;;  %v4151_v29 = vmul.f32 %v4775_v17, %v4143_v27  ;;  %4165 = sbr.rel (%p4777_p0) target bundleno = 3112 (0xc28), region = 116 }
 0xb3d   : > { %v4159_v31 = vadd.f32 %v4776_v21, %v4151_v29 }
 0xb3f   : > { %4161 = vst [vmem:[#allocation2 + $0x8] sm:$0xff] %v4159_v31 }
 0xb40   : > { %v5788_v33 = vld [vmem:[%s7045_s5 + $0x38] sm:$0xff]   ;;  %v6139_v3 = vmov 0.0   ;;  %v5789_v7 = vld [vmem:[%s7045_s5 + $0x30] sm:$0xff]   ;;  %vm6140_vm3 = vmmov 0   ;;  %v5790_v36 = vld [vmem:[%s7045_s5 + $0x28] sm:$0xff]   ;;  %v4166_v38 = vpack.c.bf16 %v4158_v25, %v4158_v25  ;;  %v4167_v46 = vpack.c.bf16 %v4159_v31, %v4159_v31 }
 0xb41   : > { %5238 = vmatprep.subr.bf16.mxu0 %v6139_v3  ;;  %5254 = vmatprep.mubr.msk.bf16.mxu0 %vm6140_vm3, %v6139_v3  ;;  %v5791_v37 = vld [vmem:[%s7045_s5 + $0x20] sm:$0xff]   ;;  %v5792_v0 = vld [vmem:[%s7045_s5 + $0x18] sm:$0xff]   ;;  %v5793_v2 = vld [vmem:[%s7045_s5 + $0x10] sm:$0xff]   ;;  %vm4197_vm4 = vcmask 1041409   ;;  %vm4289_vm5 = vcmask 517120  }
 0xb42   : > { %5239 = vmatpush3.bf16.msra.mxu0 %v5788_v33  ;;  %v4193_v4 = vunpack.c.l.b16 %v4166_v38  ;;  %v4194_v39 = vunpack.c.l.b16 %v4167_v46  ;;  %v5794_v40 = vld [vmem:[%s7045_s5 + $0x8] sm:$0xff]   ;;  %v5795_v63 = vld [vmem:[%s7045_s5] sm:$0xff]   ;;  %v4778_v26 = vld [vmem:[#allocation10] ss:$0 sm:$0xff] }
 0xb43   : > { %5240 = vmatprep.subr.bf16.mxu0 %v6139_v3 }
 0xb44   : > { %v4195_v5 = vrot.slane %v4193_v4, 7  ;;  %v4196_v41 = vrot.slane %v4194_v39, 6 }
 0xb46   : > { %5241 = vmatpush3.bf16.msra.mxu0 %v5789_v7  ;;  %v4198_v42 = vsel %vm4197_vm4, %v4196_v41, %v4195_v5 }
 0xb47   : > { %5242 = vmatprep.subr.bf16.mxu0 %v6139_v3  ;;  %v4199_v6 = vpack.c.b16 %v4198_v42, %v4198_v42 }
 0xb4a   : > { %5243 = vmatpush3.bf16.msra.mxu0 %v5790_v36 }
 0xb4b   : > { %5244 = vmatprep.subr.bf16.mxu0 %v6139_v3 }
 0xb4e   : > { %5245 = vmatpush3.bf16.msra.mxu0 %v5791_v37 }
 0xb4f   : > { %5246 = vmatprep.subr.bf16.mxu0 %v6139_v3 }
 0xb52   : > { %5247 = vmatpush3.bf16.msra.mxu0 %v5792_v0 }
 0xb53   : > { %5248 = vmatprep.subr.bf16.mxu0 %v6139_v3 }
 0xb56   : > { %5249 = vmatpush3.bf16.msra.mxu0 %v5793_v2 }
 0xb57   : > { %5250 = vmatprep.subr.bf16.mxu0 %v6139_v3 }
 0xb5a   : > { %5251 = vmatpush3.bf16.msra.mxu0 %v5794_v40 }
 0xb5b   : > { %5252 = vmatprep.subr.bf16.mxu0 %v6139_v3 }
 0xb5e   : > { %5253 = vmatpush3.bf16.msra.mxu0 %v5795_v63 }
 0xb61   : > { %5255 = vmatmul.mubr.bf16.vlgmr.msra.gmra.mxu0 %v4199_v6 }
 0xc21   : > { %v4283_v55 = vpop.f32.mrf.mxu0 }
 0xc22   : > { %v4284_v54 = vadd.f32 %v4778_v26, %v4283_v55 }
 0xc23   : > { %v5256_v43 = vpop.f32.mrf.mxu0 }
 0xc24   : > { %4290 = vst.msk [vmem:[%s7052_s12] sm:$0x3] %vm4289_vm5, %v4284_v54 }
 0xc25   : > { %v4286_v44 = vpop.f32.mrf.mxu0 }
 0xc27   : > { %v5257_v45 = vpop.f32.mrf.mxu0 }
 0xc28 PF: > { %s7102_s24 = sld [smem:[#allocation26_spill]]  ;;  %s7105_s21 = smov %s6108_s22 }
 0xc29   : > { %s7103_s25 = sld [smem:[#allocation25_spill]] }
 0xc2a   : > { %s7104_s23 = sld [smem:[#allocation27_spill]] }
 0xc2e   : > { %p29_p3 = scmp.ge.s32.totalorder %s7102_s24, 4  }
 0xc2f   : > { %s7106_s22 = smov %s7103_s25 }
 0xc30   :  { %31 = sbr.rel (!%p29_p3) target bundleno = 14 (0xe), region = 165 }
 0xc35   :  { %4302 = vsyncpa [#allocation4], 1 }
 0xc36   :  { %4304 = vsyncpa [#allocation4 + $0x1], 1 }
 0xc37   :  { %4305 = vsyncpa [#allocation6], 1 }
 0xc38   :  { %4306 = vsyncpa [#allocation9], 1 }
 0xc39   :  { %4307 = vsyncpa [#allocation12], 1 }
 0xc3a   :  { %4308 = vsyncpa [#allocation15], 1 }
 0xc3b   :  { %4310 = vsyncpa [#allocation15 + $0x1], 1 }
 0xc3c   :  { %4311 = vsyncpa [#allocation18], 1 }
 0xc3d   :  { %4313 = vsyncpa [#allocation18 + $0x1], 1 }

</bundles_post_ra>
